<compile_context>
chip_gen: v5e
topology: v5e:2x2
jax: 0.10.0
libtpu: 0.0.40
codegen_flags: <defaults>
</compile_context>

<pallas_src>
import functools

import jax
import jax.numpy as jnp
from jax import lax
from jax.experimental import pallas as pl
from jax.experimental.pallas import tpu as pltpu

EPS = 1e-5


def _round_up(x, m):
    return ((x + m - 1) // m) * m


def _vmem_capacity_bytes():
    try:
        cap = getattr(pltpu.get_tpu_info(), "vmem_capacity_bytes", None)
        if cap:
            return int(cap)
    except Exception:
        pass
    return 64 * 2 ** 20  # conservative fallback (v7x per-core VMEM)


def _pick_tile_h(Ho, N, row_bytes, fixed_bytes, budget):
    """Largest divisor of Ho whose per-step working set fits the VMEM budget.
    Only force >=2 H-steps when batch gives no pipelining (N == 1)."""
    best = 1
    for cand in range(1, Ho + 1):
        if Ho % cand:
            continue
        if N == 1 and Ho > 1 and cand == Ho:
            continue
        if fixed_bytes + cand * row_bytes <= budget:
            best = cand
    return best


def linear_bottleneck(x_nchw, p, *, t, kernel_size, stride, channels,
                      matmul_dtype=jnp.float32):
    N, Cin, H, W = x_nchw.shape
    K, S = kernel_size, stride
    pad = K // 2
    Ho = (H + 2 * pad - K) // S + 1
    Wo = (W + 2 * pad - K) // S + 1
    Hp = H + 2 * pad
    expand = (t != 1)
    dwc = Cin * t if expand else Cin
    use_shortcut = (S == 1) and (Cin <= channels)
    if use_shortcut:
        assert Ho == H and Wo == W  # odd K + pad=K//2 + stride 1

    # Slab (t*-expanded activation) stored in the matmul dtype; everything
    # else (taps, biases, accumulation) stays f32.
    slab_dtype = matmul_dtype
    is_bf16 = jnp.dtype(matmul_dtype) == jnp.dtype(jnp.bfloat16)
    sub_align = 16 if is_bf16 else 8
    lpad = 0 if pad == 0 else _round_up(pad, sub_align)   # aligned interior store
    Wslab = _round_up(lpad + W + pad, sub_align)          # whole-vreg-tile rows
    base_off = lpad - pad        # slab column of padded-coordinate column 0

    x = jnp.transpose(x_nchw, (0, 2, 3, 1))  # NHWC: channels on the lane axis

    # ---- fold eval-mode BatchNorm into the conv weights / biases ------------
    def fold(g, b, m, v):
        s = g / jnp.sqrt(v + EPS)
        return s, b - m * s

    if expand:
        s1, b1 = fold(p["g1"], p["b1"], p["m1"], p["v1"])
        w1s = (jnp.transpose(p["w1"][:, :, 0, 0], (1, 0))        # (Cin, dwc)
               * s1[None, :]).astype(matmul_dtype)
        b1f = b1.reshape(1, dwc).astype(jnp.float32)
    s2, b2 = fold(p["g2"], p["b2"], p["m2"], p["v2"])
    wds = (jnp.transpose(p["wd"][:, 0], (1, 2, 0)).reshape(K * K, 1, dwc)
           * s2.reshape(1, 1, dwc)).astype(jnp.float32)           # taps * scale
    b2f = b2.reshape(1, 1, dwc).astype(jnp.float32)
    s3, b3 = fold(p["g3"], p["b3"], p["m3"], p["v3"])
    w3s = (jnp.transpose(p["w3"][:, :, 0, 0], (1, 0))            # (dwc, channels)
           * s3[None, :]).astype(matmul_dtype)
    b3f = b3.reshape(1, channels).astype(jnp.float32)
    scmat = (jnp.eye(Cin, channels, dtype=jnp.float32)           # [I | 0] pad
             if use_shortcut else None)

    # ---- tile size from the VMEM budget --------------------------------------
    x_bytes = x_nchw.dtype.itemsize
    slab_bytes = jnp.dtype(slab_dtype).itemsize
    mm_bytes = jnp.dtype(matmul_dtype).itemsize
    row_bytes = (2 * Wo * channels * x_bytes        # double-buffered out tile
                 + 4 * Wo * dwc * 4                 # acc / d / window temporaries
                 + 2 * Wo * channels * 4            # y / shortcut temporaries
                 + S * Wslab * dwc * slab_bytes)    # depthwise input window
    fixed_bytes = (Hp * Wslab * dwc * slab_bytes    # resident slab
                   + 2 * H * W * Cin * x_bytes      # double-buffered x block
                   + 2 * H * W * dwc * 4            # stage-1 temporaries
                   + 2 * (Cin * dwc + dwc * channels) * mm_bytes
                   + (K * K + 8) * dwc * 4 + 8 * channels)
    vmem_cap = _vmem_capacity_bytes()
    TH = _pick_tile_h(Ho, N, row_bytes, fixed_bytes, int(0.5 * vmem_cap))
    NT = Ho // TH
    TH_in = (TH - 1) * S + K
    need = fixed_bytes + TH * row_bytes
    vmem_limit = int(min(int(0.85 * vmem_cap), max(32 * 2 ** 20, 2 * need)))

    # ---- fused kernel --------------------------------------------------------
    def kernel(*refs):
        it = iter(refs)
        if expand:
            w1_ref = next(it)
            b1_ref = next(it)
        x_ref = next(it)
        wd_ref = next(it)
        b2_ref = next(it)
        w3_ref = next(it)
        b3_ref = next(it)
        sc_ref = next(it) if use_shortcut else None
        o_ref = next(it)
        slab_ref = next(it)

        i = pl.program_id(1)

        # Stage 1 (once per image): expand + BN + ReLU6 into the VMEM slab.
        # Border-only zeroing; interior store starts at an aligned column.
        def stage1():
            if pad > 0:
                zr = jnp.zeros((pad, Wslab, dwc), slab_dtype)
                slab_ref[0:pad, :, :] = zr
                slab_ref[Hp - pad:Hp, :, :] = zr
                zc = jnp.zeros((H, pad, dwc), slab_dtype)
                slab_ref[pad:pad + H, base_off:base_off + pad, :] = zc
                slab_ref[pad:pad + H, lpad + W:lpad + W + pad, :] = zc
            if expand:
                # (H,W,Cin)->(H*W,Cin) is a free relayout when W % 8 == 0.
                x2d = x_ref[0].reshape(H * W, Cin)
                h = jnp.dot(x2d.astype(matmul_dtype), w1_ref[...],
                            preferred_element_type=jnp.float32)
                h = jnp.clip(h + b1_ref[...], 0.0, 6.0)
                h3 = h.reshape(H, W, dwc)
            else:
                h3 = x_ref[0]
            slab_ref[pad:pad + H, lpad:lpad + W, :] = h3.astype(slab_dtype)

        if NT == 1:
            stage1()
        else:
            pl.when(i == 0)(stage1)

        # Stage 2: KxK depthwise (BN scale folded into taps) + bias + ReLU6.
        # One sublane-offset window load per kw (K loads, not K*K); kh offsets
        # are cheap leading-axis slices.  Accumulator seeded with first tap.
        row0 = pl.multiple_of(i * (TH * S), TH * S)
        acc = None
        if S == 1:
            for kw in range(K):
                off = base_off + kw
                win = slab_ref[pl.ds(row0, TH_in), pl.ds(off, Wo), :]
                for kh in range(K):
                    term = win[kh:kh + TH] * wd_ref[kh * K + kw]
                    acc = term if acc is None else acc + term
        else:
            rows = slab_ref[pl.ds(row0, TH_in), :, :]
            for kw in range(K):
                off = base_off + kw
                cols = lax.slice(rows, (0, off, 0),
                                 (TH_in, off + (Wo - 1) * S + 1, dwc),
                                 (1, S, 1))                     # (TH_in, Wo, dwc)
                for kh in range(K):
                    patch = lax.slice(cols, (kh, 0, 0),
                                      (kh + (TH - 1) * S + 1, Wo, dwc),
                                      (S, 1, 1))                # (TH, Wo, dwc)
                    term = patch * wd_ref[kh * K + kw]
                    acc = term if acc is None else acc + term
        d = jnp.clip(acc + b2_ref[...], 0.0, 6.0)               # f32 (TH,Wo,dwc)

        # Stage 3: 1x1 project + bias.  Shortcut fused as a tiny identity-pad
        # matmul so the output is ONE dense full-lane-width store.
        d2 = d.reshape(TH * Wo, dwc)
        y = jnp.dot(d2.astype(matmul_dtype), w3_ref[...],
                    preferred_element_type=jnp.float32) + b3_ref[...]
        if use_shortcut:
            r0 = pl.multiple_of(i * TH, TH)
            xs = x_ref[0, pl.ds(r0, TH), :, :].reshape(TH * Wo, Cin)
            y = y + jnp.dot(xs.astype(jnp.float32), sc_ref[...],
                            preferred_element_type=jnp.float32)
        o_ref[...] = y.reshape(1, TH, Wo, channels).astype(o_ref.dtype)

    # ---- specs / call --------------------------------------------------------
    in_specs = []
    args = []
    if expand:
        in_specs += [pl.BlockSpec((Cin, dwc), lambda n, i: (0, 0)),
                     pl.BlockSpec((1, dwc), lambda n, i: (0, 0))]
        args += [w1s, b1f]
    in_specs += [
        # full image per batch element; constant in i -> stays resident in
        # VMEM across all row tiles of one image.
        pl.BlockSpec((1, H, W, Cin), lambda n, i: (n, 0, 0, 0)),
        pl.BlockSpec((K * K, 1, dwc), lambda n, i: (0, 0, 0)),
        pl.BlockSpec((1, 1, dwc), lambda n, i: (0, 0, 0)),
        pl.BlockSpec((dwc, channels), lambda n, i: (0, 0)),
        pl.BlockSpec((1, channels), lambda n, i: (0, 0)),
    ]
    args += [x, wds, b2f, w3s, b3f]
    if use_shortcut:
        in_specs += [pl.BlockSpec((Cin, channels), lambda n, i: (0, 0))]
        args += [scmat]

    out = pl.pallas_call(
        kernel,
        out_shape=jax.ShapeDtypeStruct((N, Ho, Wo, channels), x.dtype),
        grid=(N, NT),
        in_specs=in_specs,
        out_specs=pl.BlockSpec((1, TH, Wo, channels), lambda n, i: (n, i, 0, 0)),
        scratch_shapes=[pltpu.VMEM((Hp, Wslab, dwc), slab_dtype)],
        compiler_params=pltpu.CompilerParams(
            dimension_semantics=("parallel", "arbitrary"),
            vmem_limit_bytes=vmem_limit),
    )(*args)

    return jnp.transpose(out, (0, 3, 1, 2))  # back to NCHW


# ---------------------------------------------------------------------------
# Pure-JAX reference (lax.conv) for verification
# ---------------------------------------------------------------------------
def _bn_nchw(y, g, b, m, v):
    inv = g / jnp.sqrt(v + EPS)
    return y * inv[None, :, None, None] + (b - m * inv)[None, :, None, None]


def ref_forward(x, p, *, t, kernel_size, stride, channels):
    N, Cin, H, W = x.shape
    y = x
    if t != 1:
        y = lax.conv_general_dilated(
            y, p["w1"], (1, 1), "VALID",
            dimension_numbers=("NCHW", "OIHW", "NCHW"))
        y = jnp.clip(_bn_nchw(y, p["g1"], p["b1"], p["m1"], p["v1"]), 0.0, 6.0)
    pad = kernel_size // 2
    dwc = y.shape[1]
    y = lax.conv_general_dilated(
        y, p["wd"], (stride, stride), [(pad, pad), (pad, pad)],
        dimension_numbers=("NCHW", "OIHW", "NCHW"), feature_group_count=dwc)
    y = jnp.clip(_bn_nchw(y, p["g2"], p["b2"], p["m2"], p["v2"]), 0.0, 6.0)
    y = lax.conv_general_dilated(
        y, p["w3"], (1, 1), "VALID",
        dimension_numbers=("NCHW", "OIHW", "NCHW"))
    y = _bn_nchw(y, p["g3"], p["b3"], p["m3"], p["v3"])
    if stride == 1 and Cin <= channels:
        y = y.at[:, :Cin].add(x)
    return y


# ---------------------------------------------------------------------------
if __name__ == "__main__":
    # Module config: LinearBottleneck(in_channels=4, channels=16, t=6,
    #                                 kernel_size=3, stride=1)
    N, Cin, H, W = 2, 4, 16, 16
    channels, t, K, stride = 16, 6, 3, 1
    dwc = Cin * t

    key = jax.random.PRNGKey(0)
    ks = jax.random.split(key, 16)
    f32 = jnp.float32
    p = {
        # 1x1 expand conv (OIHW) + BN
        "w1": 0.1 * jax.random.normal(ks[0], (dwc, Cin, 1, 1), f32),
        "g1": 1.0 + 0.05 * jax.random.normal(ks[1], (dwc,), f32),
        "b1": 0.05 * jax.random.normal(ks[2], (dwc,), f32),
        "m1": 0.05 * jax.random.normal(ks[3], (dwc,), f32),
        "v1": 0.5 + 0.1 * jnp.abs(jax.random.normal(ks[4], (dwc,), f32)),
        # depthwise KxK conv (OIHW, groups=dwc) + BN
        "wd": 0.1 * jax.random.normal(ks[5], (dwc, 1, K, K), f32),
        "g2": 1.0 + 0.05 * jax.random.normal(ks[6], (dwc,), f32),
        "b2": 0.05 * jax.random.normal(ks[7], (dwc,), f32),
        "m2": 0.05 * jax.random.normal(ks[8], (dwc,), f32),
        "v2": 0.5 + 0.1 * jnp.abs(jax.random.normal(ks[9], (dwc,), f32)),
        # 1x1 project conv (OIHW) + BN (Identity activation)
        "w3": 0.1 * jax.random.normal(ks[10], (channels, dwc, 1, 1), f32),
        "g3": 1.0 + 0.05 * jax.random.normal(ks[11], (channels,), f32),
        "b3": 0.05 * jax.random.normal(ks[12], (channels,), f32),
        "m3": 0.05 * jax.random.normal(ks[13], (channels,), f32),
        "v3": 0.5 + 0.1 * jnp.abs(jax.random.normal(ks[14], (channels,), f32)),
    }
    x = jax.random.normal(ks[15], (N, Cin, H, W), f32)

    ref = ref_forward(x, p, t=t, kernel_size=K, stride=stride, channels=channels)

    # f32 fused kernel.
    fwd = jax.jit(functools.partial(
        linear_bottleneck, t=t, kernel_size=K, stride=stride, channels=channels))
    out = jax.block_until_ready(fwd(x, p))
    assert out.shape == ref.shape == (N, channels, H, W)
    err = float(jnp.max(jnp.abs(out - ref)))
    assert err < 5e-3, f"f32 path mismatch: {err}"

    # bf16 matmul operands + bf16 slab (v6e/v7x MXU path); accumulation f32.
    fwd_bf16 = jax.jit(functools.partial(
        linear_bottleneck, t=t, kernel_size=K, stride=stride, channels=channels,
        matmul_dtype=jnp.bfloat16))
    out_bf16 = jax.block_until_ready(fwd_bf16(x, p))
    err_abs = float(jnp.max(jnp.abs(out_bf16 - ref)))
    err_rel = float(jnp.max(jnp.abs(out_bf16 - ref) / (jnp.abs(ref) + 1.0)))
    assert err_abs < 0.3 and err_rel < 0.1, \
        f"bf16 path mismatch: abs={err_abs} rel={err_rel}"

    print("KERNEL_OK")
</pallas_src>

<mosaic_0001>
module attributes {stable_mosaic.version = 11 : i64} {
  func.func @kernel(%arg0: i32, %arg1: i32, %arg2: memref<4x24xf32, #tpu.memory_space<vmem>>, %arg3: memref<1x24xf32, #tpu.memory_space<vmem>>, %arg4: memref<1x16x16x4xf32, #tpu.memory_space<vmem>>, %arg5: memref<9x1x24xf32, #tpu.memory_space<vmem>>, %arg6: memref<1x1x24xf32, #tpu.memory_space<vmem>>, %arg7: memref<24x16xf32, #tpu.memory_space<vmem>>, %arg8: memref<1x16xf32, #tpu.memory_space<vmem>>, %arg9: memref<4x16xf32, #tpu.memory_space<vmem>>, %arg10: memref<1x16x16x16xf32, #tpu.memory_space<vmem>>, %arg11: memref<18x32x24xf32, #tpu.memory_space<vmem>>) attributes {dimension_semantics = [#tpu.dimension_semantics<parallel>, #tpu.dimension_semantics<arbitrary>], iteration_bounds = array<i64: 2, 1>, scalar_prefetch = 0 : i64, scratch_operands = 1 : i64, tpu.core_type = #tpu.core_type<tc>, window_params = [{pipeline_mode = #tpu.pipeline_mode<synchronous>, transform_indices = @transform_0, window_bounds = array<i64: 4, 24>}, {pipeline_mode = #tpu.pipeline_mode<synchronous>, transform_indices = @transform_1, window_bounds = array<i64: 1, 24>}, {transform_indices = @transform_2, window_bounds = array<i64: 1, 16, 16, 4>}, {pipeline_mode = #tpu.pipeline_mode<synchronous>, transform_indices = @transform_3, window_bounds = array<i64: 9, 1, 24>}, {pipeline_mode = #tpu.pipeline_mode<synchronous>, transform_indices = @transform_4, window_bounds = array<i64: 1, 1, 24>}, {pipeline_mode = #tpu.pipeline_mode<synchronous>, transform_indices = @transform_5, window_bounds = array<i64: 24, 16>}, {pipeline_mode = #tpu.pipeline_mode<synchronous>, transform_indices = @transform_6, window_bounds = array<i64: 1, 16>}, {pipeline_mode = #tpu.pipeline_mode<synchronous>, transform_indices = @transform_7, window_bounds = array<i64: 4, 16>}, {transform_indices = @transform_8, window_bounds = array<i64: 1, 16, 16, 16>}]} {
    %cst = arith.constant 0.000000e+00 : f32
    %0 = vector.broadcast %cst : f32 to vector<1x32x24xf32>
    %c0 = arith.constant 0 : index
    %c0_0 = arith.constant 0 : index
    %c0_1 = arith.constant 0 : index
    %1 = vector.load %arg11[%c0, %c0_0, %c0_1] : memref<18x32x24xf32, #tpu.memory_space<vmem>>, vector<1x32x24xf32>
    tpu.vector_store %arg11[%c0, %c0_0, %c0_1], %0 {strides = array<i32>} : memref<18x32x24xf32, #tpu.memory_space<vmem>>, vector<1x32x24xf32>,
    %c17 = arith.constant 17 : index
    %c0_2 = arith.constant 0 : index
    %c0_3 = arith.constant 0 : index
    %2 = vector.load %arg11[%c17, %c0_2, %c0_3] : memref<18x32x24xf32, #tpu.memory_space<vmem>>, vector<1x32x24xf32>
    tpu.vector_store %arg11[%c17, %c0_2, %c0_3], %0 {strides = array<i32>} : memref<18x32x24xf32, #tpu.memory_space<vmem>>, vector<1x32x24xf32>,
    %cst_4 = arith.constant 0.000000e+00 : f32
    %3 = vector.broadcast %cst_4 : f32 to vector<16x1x24xf32>
    %c1 = arith.constant 1 : index
    %c7 = arith.constant 7 : index
    %c0_5 = arith.constant 0 : index
    %4 = vector.load %arg11[%c1, %c7, %c0_5] : memref<18x32x24xf32, #tpu.memory_space<vmem>>, vector<16x1x24xf32>
    tpu.vector_store %arg11[%c1, %c7, %c0_5], %3 {strides = array<i32>} : memref<18x32x24xf32, #tpu.memory_space<vmem>>, vector<16x1x24xf32>,
    %c1_6 = arith.constant 1 : index
    %c24 = arith.constant 24 : index
    %c0_7 = arith.constant 0 : index
    %5 = vector.load %arg11[%c1_6, %c24, %c0_7] : memref<18x32x24xf32, #tpu.memory_space<vmem>>, vector<16x1x24xf32>
    tpu.vector_store %arg11[%c1_6, %c24, %c0_7], %3 {strides = array<i32>} : memref<18x32x24xf32, #tpu.memory_space<vmem>>, vector<16x1x24xf32>,
    %c0_8 = arith.constant 0 : index
    %c0_9 = arith.constant 0 : index
    %c0_10 = arith.constant 0 : index
    %c0_11 = arith.constant 0 : index
    %6 = vector.load %arg4[%c0_8, %c0_9, %c0_10, %c0_11] : memref<1x16x16x4xf32, #tpu.memory_space<vmem>>, vector<1x16x16x4xf32>
    %7 = vector.shape_cast %6 : vector<1x16x16x4xf32> to vector<16x16x4xf32>
    %8 = vector.shape_cast %7 : vector<16x16x4xf32> to vector<256x4xf32>
    %c0_12 = arith.constant 0 : index
    %c0_13 = arith.constant 0 : index
    %9 = vector.load %arg2[%c0_12, %c0_13] : memref<4x24xf32, #tpu.memory_space<vmem>>, vector<4x24xf32>
    %cst_14 = arith.constant dense<0.000000e+00> : vector<256x24xf32>
    %10 = tpu.matmul %8, %9, %cst_14 {dimension_numbers = #tpu.dot_dimension_numbers<[1], [0], [0], [1], [0, 0, 1, 1], [], []>} : vector<256x4xf32>, vector<4x24xf32>, vector<256x24xf32> -> vector<256x24xf32>
    %c0_15 = arith.constant 0 : index
    %c0_16 = arith.constant 0 : index
    %11 = vector.load %arg3[%c0_15, %c0_16] : memref<1x24xf32, #tpu.memory_space<vmem>>, vector<1x24xf32>
    %12 = vector.broadcast %11 : vector<1x24xf32> to vector<256x24xf32>
    %13 = arith.addf %10, %12 : vector<256x24xf32>
    %cst_17 = arith.constant 0.000000e+00 : f32
    %cst_18 = arith.constant 6.000000e+00 : f32
    %14 = vector.broadcast %cst_17 : f32 to vector<256x24xf32>
    %15 = arith.maximumf %14, %13 : vector<256x24xf32>
    %16 = vector.broadcast %cst_18 : f32 to vector<256x24xf32>
    %17 = arith.minimumf %16, %15 : vector<256x24xf32>
    %18 = vector.shape_cast %17 : vector<256x24xf32> to vector<16x16x24xf32>
    %c1_19 = arith.constant 1 : index
    %c8 = arith.constant 8 : index
    %c0_20 = arith.constant 0 : index
    %19 = vector.load %arg11[%c1_19, %c8, %c0_20] : memref<18x32x24xf32, #tpu.memory_space<vmem>>, vector<16x16x24xf32>
    tpu.vector_store %arg11[%c1_19, %c8, %c0_20], %18 {strides = array<i32>} : memref<18x32x24xf32, #tpu.memory_space<vmem>>, vector<16x16x24xf32>,
    %c16_i32 = arith.constant 16 : i32
    %20 = arith.muli %arg1, %c16_i32 : i32
    %21 = tpu.assume_multiple %20, 16 : i32
    %22 = arith.index_cast %21 : i32 to index
    %c7_21 = arith.constant 7 : index
    %c0_22 = arith.constant 0 : index
    %23 = vector.load %arg11[%22, %c7_21, %c0_22] : memref<18x32x24xf32, #tpu.memory_space<vmem>>, vector<18x16x24xf32>
    %24 = vector.extract_strided_slice %23 {offsets = [0, 0, 0], sizes = [16, 16, 24], strides = [1, 1, 1]} : vector<18x16x24xf32> to vector<16x16x24xf32>
    %c0_23 = arith.constant 0 : index
    %c0_24 = arith.constant 0 : index
    %c0_25 = arith.constant 0 : index
    %25 = vector.load %arg5[%c0_23, %c0_24, %c0_25] : memref<9x1x24xf32, #tpu.memory_space<vmem>>, vector<1x1x24xf32>
    %26 = vector.shape_cast %25 : vector<1x1x24xf32> to vector<1x24xf32>
    %27 = vector.shape_cast %26 : vector<1x24xf32> to vector<1x1x24xf32>
    %28 = vector.broadcast %27 : vector<1x1x24xf32> to vector<16x16x24xf32>
    %29 = arith.mulf %24, %28 : vector<16x16x24xf32>
    %30 = vector.extract_strided_slice %23 {offsets = [1, 0, 0], sizes = [16, 16, 24], strides = [1, 1, 1]} : vector<18x16x24xf32> to vector<16x16x24xf32>
    %c3 = arith.constant 3 : index
    %c0_26 = arith.constant 0 : index
    %c0_27 = arith.constant 0 : index
    %31 = vector.load %arg5[%c3, %c0_26, %c0_27] : memref<9x1x24xf32, #tpu.memory_space<vmem>>, vector<1x1x24xf32>
    %32 = vector.shape_cast %31 : vector<1x1x24xf32> to vector<1x24xf32>
    %33 = vector.shape_cast %32 : vector<1x24xf32> to vector<1x1x24xf32>
    %34 = vector.broadcast %33 : vector<1x1x24xf32> to vector<16x16x24xf32>
    %35 = arith.mulf %30, %34 : vector<16x16x24xf32>
    %36 = arith.addf %29, %35 : vector<16x16x24xf32>
    %37 = vector.extract_strided_slice %23 {offsets = [2, 0, 0], sizes = [16, 16, 24], strides = [1, 1, 1]} : vector<18x16x24xf32> to vector<16x16x24xf32>
    %c6 = arith.constant 6 : index
    %c0_28 = arith.constant 0 : index
    %c0_29 = arith.constant 0 : index
    %38 = vector.load %arg5[%c6, %c0_28, %c0_29] : memref<9x1x24xf32, #tpu.memory_space<vmem>>, vector<1x1x24xf32>
    %39 = vector.shape_cast %38 : vector<1x1x24xf32> to vector<1x24xf32>
    %40 = vector.shape_cast %39 : vector<1x24xf32> to vector<1x1x24xf32>
    %41 = vector.broadcast %40 : vector<1x1x24xf32> to vector<16x16x24xf32>
    %42 = arith.mulf %37, %41 : vector<16x16x24xf32>
    %43 = arith.addf %36, %42 : vector<16x16x24xf32>
    %44 = arith.index_cast %21 : i32 to index
    %c8_30 = arith.constant 8 : index
    %c0_31 = arith.constant 0 : index
    %45 = vector.load %arg11[%44, %c8_30, %c0_31] : memref<18x32x24xf32, #tpu.memory_space<vmem>>, vector<18x16x24xf32>
    %46 = vector.extract_strided_slice %45 {offsets = [0, 0, 0], sizes = [16, 16, 24], strides = [1, 1, 1]} : vector<18x16x24xf32> to vector<16x16x24xf32>
    %c1_32 = arith.constant 1 : index
    %c0_33 = arith.constant 0 : index
    %c0_34 = arith.constant 0 : index
    %47 = vector.load %arg5[%c1_32, %c0_33, %c0_34] : memref<9x1x24xf32, #tpu.memory_space<vmem>>, vector<1x1x24xf32>
    %48 = vector.shape_cast %47 : vector<1x1x24xf32> to vector<1x24xf32>
    %49 = vector.shape_cast %48 : vector<1x24xf32> to vector<1x1x24xf32>
    %50 = vector.broadcast %49 : vector<1x1x24xf32> to vector<16x16x24xf32>
    %51 = arith.mulf %46, %50 : vector<16x16x24xf32>
    %52 = arith.addf %43, %51 : vector<16x16x24xf32>
    %53 = vector.extract_strided_slice %45 {offsets = [1, 0, 0], sizes = [16, 16, 24], strides = [1, 1, 1]} : vector<18x16x24xf32> to vector<16x16x24xf32>
    %c4 = arith.constant 4 : index
    %c0_35 = arith.constant 0 : index
    %c0_36 = arith.constant 0 : index
    %54 = vector.load %arg5[%c4, %c0_35, %c0_36] : memref<9x1x24xf32, #tpu.memory_space<vmem>>, vector<1x1x24xf32>
    %55 = vector.shape_cast %54 : vector<1x1x24xf32> to vector<1x24xf32>
    %56 = vector.shape_cast %55 : vector<1x24xf32> to vector<1x1x24xf32>
    %57 = vector.broadcast %56 : vector<1x1x24xf32> to vector<16x16x24xf32>
    %58 = arith.mulf %53, %57 : vector<16x16x24xf32>
    %59 = arith.addf %52, %58 : vector<16x16x24xf32>
    %60 = vector.extract_strided_slice %45 {offsets = [2, 0, 0], sizes = [16, 16, 24], strides = [1, 1, 1]} : vector<18x16x24xf32> to vector<16x16x24xf32>
    %c7_37 = arith.constant 7 : index
    %c0_38 = arith.constant 0 : index
    %c0_39 = arith.constant 0 : index
    %61 = vector.load %arg5[%c7_37, %c0_38, %c0_39] : memref<9x1x24xf32, #tpu.memory_space<vmem>>, vector<1x1x24xf32>
    %62 = vector.shape_cast %61 : vector<1x1x24xf32> to vector<1x24xf32>
    %63 = vector.shape_cast %62 : vector<1x24xf32> to vector<1x1x24xf32>
    %64 = vector.broadcast %63 : vector<1x1x24xf32> to vector<16x16x24xf32>
    %65 = arith.mulf %60, %64 : vector<16x16x24xf32>
    %66 = arith.addf %59, %65 : vector<16x16x24xf32>
    %67 = arith.index_cast %21 : i32 to index
    %c9 = arith.constant 9 : index
    %c0_40 = arith.constant 0 : index
    %68 = vector.load %arg11[%67, %c9, %c0_40] : memref<18x32x24xf32, #tpu.memory_space<vmem>>, vector<18x16x24xf32>
    %69 = vector.extract_strided_slice %68 {offsets = [0, 0, 0], sizes = [16, 16, 24], strides = [1, 1, 1]} : vector<18x16x24xf32> to vector<16x16x24xf32>
    %c2 = arith.constant 2 : index
    %c0_41 = arith.constant 0 : index
    %c0_42 = arith.constant 0 : index
    %70 = vector.load %arg5[%c2, %c0_41, %c0_42] : memref<9x1x24xf32, #tpu.memory_space<vmem>>, vector<1x1x24xf32>
    %71 = vector.shape_cast %70 : vector<1x1x24xf32> to vector<1x24xf32>
    %72 = vector.shape_cast %71 : vector<1x24xf32> to vector<1x1x24xf32>
    %73 = vector.broadcast %72 : vector<1x1x24xf32> to vector<16x16x24xf32>
    %74 = arith.mulf %69, %73 : vector<16x16x24xf32>
    %75 = arith.addf %66, %74 : vector<16x16x24xf32>
    %76 = vector.extract_strided_slice %68 {offsets = [1, 0, 0], sizes = [16, 16, 24], strides = [1, 1, 1]} : vector<18x16x24xf32> to vector<16x16x24xf32>
    %c5 = arith.constant 5 : index
    %c0_43 = arith.constant 0 : index
    %c0_44 = arith.constant 0 : index
    %77 = vector.load %arg5[%c5, %c0_43, %c0_44] : memref<9x1x24xf32, #tpu.memory_space<vmem>>, vector<1x1x24xf32>
    %78 = vector.shape_cast %77 : vector<1x1x24xf32> to vector<1x24xf32>
    %79 = vector.shape_cast %78 : vector<1x24xf32> to vector<1x1x24xf32>
    %80 = vector.broadcast %79 : vector<1x1x24xf32> to vector<16x16x24xf32>
    %81 = arith.mulf %76, %80 : vector<16x16x24xf32>
    %82 = arith.addf %75, %81 : vector<16x16x24xf32>
    %83 = vector.extract_strided_slice %68 {offsets = [2, 0, 0], sizes = [16, 16, 24], strides = [1, 1, 1]} : vector<18x16x24xf32> to vector<16x16x24xf32>
    %c8_45 = arith.constant 8 : index
    %c0_46 = arith.constant 0 : index
    %c0_47 = arith.constant 0 : index
    %84 = vector.load %arg5[%c8_45, %c0_46, %c0_47] : memref<9x1x24xf32, #tpu.memory_space<vmem>>, vector<1x1x24xf32>
    %85 = vector.shape_cast %84 : vector<1x1x24xf32> to vector<1x24xf32>
    %86 = vector.shape_cast %85 : vector<1x24xf32> to vector<1x1x24xf32>
    %87 = vector.broadcast %86 : vector<1x1x24xf32> to vector<16x16x24xf32>
    %88 = arith.mulf %83, %87 : vector<16x16x24xf32>
    %89 = arith.addf %82, %88 : vector<16x16x24xf32>
    %c0_48 = arith.constant 0 : index
    %c0_49 = arith.constant 0 : index
    %c0_50 = arith.constant 0 : index
    %90 = vector.load %arg6[%c0_48, %c0_49, %c0_50] : memref<1x1x24xf32, #tpu.memory_space<vmem>>, vector<1x1x24xf32>
    %91 = vector.broadcast %90 : vector<1x1x24xf32> to vector<16x16x24xf32>
    %92 = arith.addf %89, %91 : vector<16x16x24xf32>
    %cst_51 = arith.constant 0.000000e+00 : f32
    %cst_52 = arith.constant 6.000000e+00 : f32
    %93 = vector.broadcast %cst_51 : f32 to vector<16x16x24xf32>
    %94 = arith.maximumf %93, %92 : vector<16x16x24xf32>
    %95 = vector.broadcast %cst_52 : f32 to vector<16x16x24xf32>
    %96 = arith.minimumf %95, %94 : vector<16x16x24xf32>
    %97 = vector.shape_cast %96 : vector<16x16x24xf32> to vector<256x24xf32>
    %c0_53 = arith.constant 0 : index
    %c0_54 = arith.constant 0 : index
    %98 = vector.load %arg7[%c0_53, %c0_54] : memref<24x16xf32, #tpu.memory_space<vmem>>, vector<24x16xf32>
    %cst_55 = arith.constant dense<0.000000e+00> : vector<256x16xf32>
    %99 = tpu.matmul %97, %98, %cst_55 {dimension_numbers = #tpu.dot_dimension_numbers<[1], [0], [0], [1], [0, 0, 1, 1], [], []>} : vector<256x24xf32>, vector<24x16xf32>, vector<256x16xf32> -> vector<256x16xf32>
    %c0_56 = arith.constant 0 : index
    %c0_57 = arith.constant 0 : index
    %100 = vector.load %arg8[%c0_56, %c0_57] : memref<1x16xf32, #tpu.memory_space<vmem>>, vector<1x16xf32>
    %101 = vector.broadcast %100 : vector<1x16xf32> to vector<256x16xf32>
    %102 = arith.addf %99, %101 : vector<256x16xf32>
    %c16_i32_58 = arith.constant 16 : i32
    %103 = arith.muli %arg1, %c16_i32_58 : i32
    %104 = tpu.assume_multiple %103, 16 : i32
    %c0_59 = arith.constant 0 : index
    %105 = arith.index_cast %104 : i32 to index
    %c0_60 = arith.constant 0 : index
    %c0_61 = arith.constant 0 : index
    %106 = vector.load %arg4[%c0_59, %105, %c0_60, %c0_61] : memref<1x16x16x4xf32, #tpu.memory_space<vmem>>, vector<1x16x16x4xf32>
    %107 = vector.shape_cast %106 : vector<1x16x16x4xf32> to vector<16x16x4xf32>
    %108 = vector.shape_cast %107 : vector<16x16x4xf32> to vector<256x4xf32>
    %c0_62 = arith.constant 0 : index
    %c0_63 = arith.constant 0 : index
    %109 = vector.load %arg9[%c0_62, %c0_63] : memref<4x16xf32, #tpu.memory_space<vmem>>, vector<4x16xf32>
    %cst_64 = arith.constant dense<0.000000e+00> : vector<256x16xf32>
    %110 = tpu.matmul %108, %109, %cst_64 {dimension_numbers = #tpu.dot_dimension_numbers<[1], [0], [0], [1], [0, 0, 1, 1], [], []>} : vector<256x4xf32>, vector<4x16xf32>, vector<256x16xf32> -> vector<256x16xf32>
    %111 = arith.addf %102, %110 : vector<256x16xf32>
    %112 = vector.shape_cast %111 : vector<256x16xf32> to vector<1x16x16x16xf32>
    %c0_65 = arith.constant 0 : index
    %c0_66 = arith.constant 0 : index
    %c0_67 = arith.constant 0 : index
    %c0_68 = arith.constant 0 : index
    %113 = vector.load %arg10[%c0_65, %c0_66, %c0_67, %c0_68] : memref<1x16x16x16xf32, #tpu.memory_space<vmem>>, vector<1x16x16x16xf32>
    tpu.vector_store %arg10[%c0_65, %c0_66, %c0_67, %c0_68], %112 {strides = array<i32>} : memref<1x16x16x16xf32, #tpu.memory_space<vmem>>, vector<1x16x16x16xf32>,
    return
  }
  func.func @transform_0(%arg0: i32, %arg1: i32) -> (i32, i32) {
    %c0_i32 = arith.constant 0 : i32
    %c0_i32_0 = arith.constant 0 : i32
    %c0_i32_1 = arith.constant 0 : i32
    return %c0_i32, %c0_i32_0 : i32, i32
  }
  func.func @transform_1(%arg0: i32, %arg1: i32) -> (i32, i32) {
    %c0_i32 = arith.constant 0 : i32
    %c0_i32_0 = arith.constant 0 : i32
    %c0_i32_1 = arith.constant 0 : i32
    return %c0_i32, %c0_i32_0 : i32, i32
  }
  func.func @transform_2(%arg0: i32, %arg1: i32) -> (i32, i32, i32, i32) {
    %c0_i32 = arith.constant 0 : i32
    %c0_i32_0 = arith.constant 0 : i32
    %c0_i32_1 = arith.constant 0 : i32
    %c0_i32_2 = arith.constant 0 : i32
    return %arg0, %c0_i32, %c0_i32_0, %c0_i32_1 : i32, i32, i32, i32
  }
  func.func @transform_3(%arg0: i32, %arg1: i32) -> (i32, i32, i32) {
    %c0_i32 = arith.constant 0 : i32
    %c0_i32_0 = arith.constant 0 : i32
    %c0_i32_1 = arith.constant 0 : i32
    %c0_i32_2 = arith.constant 0 : i32
    return %c0_i32, %c0_i32_0, %c0_i32_1 : i32, i32, i32
  }
  func.func @transform_4(%arg0: i32, %arg1: i32) -> (i32, i32, i32) {
    %c0_i32 = arith.constant 0 : i32
    %c0_i32_0 = arith.constant 0 : i32
    %c0_i32_1 = arith.constant 0 : i32
    %c0_i32_2 = arith.constant 0 : i32
    return %c0_i32, %c0_i32_0, %c0_i32_1 : i32, i32, i32
  }
  func.func @transform_5(%arg0: i32, %arg1: i32) -> (i32, i32) {
    %c0_i32 = arith.constant 0 : i32
    %c0_i32_0 = arith.constant 0 : i32
    %c0_i32_1 = arith.constant 0 : i32
    return %c0_i32, %c0_i32_0 : i32, i32
  }
  func.func @transform_6(%arg0: i32, %arg1: i32) -> (i32, i32) {
    %c0_i32 = arith.constant 0 : i32
    %c0_i32_0 = arith.constant 0 : i32
    %c0_i32_1 = arith.constant 0 : i32
    return %c0_i32, %c0_i32_0 : i32, i32
  }
  func.func @transform_7(%arg0: i32, %arg1: i32) -> (i32, i32) {
    %c0_i32 = arith.constant 0 : i32
    %c0_i32_0 = arith.constant 0 : i32
    %c0_i32_1 = arith.constant 0 : i32
    return %c0_i32, %c0_i32_0 : i32, i32
  }
  func.func @transform_8(%arg0: i32, %arg1: i32) -> (i32, i32, i32, i32) {
    %c0_i32 = arith.constant 0 : i32
    %c0_i32_0 = arith.constant 0 : i32
    %c0_i32_1 = arith.constant 0 : i32
    return %arg0, %arg1, %c0_i32, %c0_i32_0 : i32, i32, i32, i32
  }
}

</mosaic_0001>

<bundles_post_ra>
// kernel: linear_bottleneck.1
= control target key start
LH: loop header
LB: loop body
LE: loop exit
PB: predicated region body
PF: predicated region fallthrough
CT: control target
= control target key end

     0   :  { %s2383_s27 = smov 0   ;;  %s2385_s28 = smov 0   ;;  %s3860_s0 = inlined_call_operand.vmem [shape: f32[4,24], index: 0, kind: input, shape index: {}]   ;;  %s3861_s1 = inlined_call_operand.vmem [shape: f32[1,24], index: 1, kind: input, shape index: {}]   ;;  %s3862_s2 = inlined_call_operand.vmem [shape: f32[2,16,16,4], index: 2, kind: input, shape index: {}]   ;;  %s3863_s3 = inlined_call_operand.vmem [shape: f32[9,1,24], index: 3, kind: input, shape index: {}]   ;;  %s3864_s4 = inlined_call_operand.vmem [shape: f32[1,1,24], index: 4, kind: input, shape index: {}]   ;;  %s3865_s5 = inlined_call_operand.vmem [shape: f32[24,16], index: 5, kind: input, shape index: {}]   ;;  %s3866_s6 = inlined_call_operand.vmem [shape: f32[1,16], index: 6, kind: input, shape index: {}]   ;;  %s3867_s7 = inlined_call_operand.vmem [shape: f32[4,16], index: 7, kind: input, shape index: {}]   ;;  %s3868_s8 = inlined_call_operand.vmem [shape: f32[2,16,16,16], index: 8, kind: output, shape index: {}]  }
   0x1   :  { %s2387_s29 = smov 0  }
   0x2 LB: > { %s30_s30 = sadd.s32 1, %s2331_s28  ;;  %p2144_p0 = scmp.ge.s32.totalorder %s2335_s29, 1  ;;  %s2335_s29 = sphi %s2387_s29, %s18_s29   ;;  %s2331_s28 = sphi %s2385_s28, %s3928_s28   ;;  %s2327_s27 = sphi %s2383_s27, %s3927_s27  }
   0x3   : > { %p32_p1 = scmp.ge.s32.totalorder %s30_s30, 2  ;;  %p276_p2 = scmp.lt.s32.totalorder %s2335_s29, 3 }
   0x5   : > { %s3930_s30 = smov (%p32_p1, %s30_s30), 0  ;;  %p277_p3 = pnand %p2144_p0, %p276_p2 }
   0x7   : > { %280 = sbr.rel (%p277_p3) target bundleno = 621 (0x26d), region = 52 }
   0xc   : > { %v407_v0 = vld [vmem:[%s3860_s0] sm:$0xf]  ;;  %vm509_vm0 = vcmask 1043456   ;;  %p315_p4 = scmp.lt.s32.totalorder %s2327_s27, 1  ;;  %vm412_vm1 = vcmask 31744   ;;  %vm331_vm2 = vcmask 195584  }
   0xd   : > { %2149 = vmatpush.msk.msra.mxu0 %vm509_vm0, %v407_v0  ;;  %2259 = vmatpush.msk.msra.mxu3 %vm509_vm0, %v407_v0  ;;  %v2337_v14 = vmov 0.0   ;;  %vm342_vm3 = vcmask 188416   ;;  %v2536_v20 = vld [vmem:[%s3861_s1] ss:$0 sm:$0xff]  ;;  %v1523_v35 = vld [vmem:[%s3865_s5 + $0x10] sm:$0xff]  ;;  %v1522_v39 = vld [vmem:[%s3865_s5 + $0x8] sm:$0xff] }
   0xe   : > { %s3932_s27 = smov (!%p315_p4, %s2327_s27), 1  ;;  %332 = vst.msk [vmem:[#allocation2] sm:$0xff] %vm331_vm2, %v2337_v14  ;;  %v1771_v28 = vld [vmem:[%s3867_s7] sm:$0xf]  ;;  %1637 = vmatpush.msra.mxu1 %v1523_v35  ;;  %v2637_v54 = vld [vmem:[%s3863_s3 + $0x6] ss:$0 sm:$0xff] }
   0xf   : > { %s2257_s11 = sshll.u32 %s3932_s27, 8  ;;  %333 = vst.msk [vmem:[#allocation2 + $0x8] sm:$0xff] %vm331_vm2, %v2337_v14  ;;  %2222 = vmatpush.msk.msra.mxu2 %vm509_vm0, %v1771_v28  ;;  %2260 = vmatpush.msrb.mxu3 %v1523_v35  ;;  %v1521_v41 = vld [vmem:[%s3865_s5] sm:$0xff]  ;;  %v2699_v35 = vld [vmem:[%s3863_s3 + $0x8] ss:$0 sm:$0xff]  ;;  %vm2016_vm4 = vcmask 130048  }
  0x10   : > { %s2414_s14 = scalar_lea.vmem %s3862_s2, %s2257_s11  ;;  %334 = vst.msk [vmem:[#allocation2 + $0x10] sm:$0xff] %vm331_vm2, %v2337_v14  ;;  %1638 = vmatpush.msra.mxu1 %v1522_v39  ;;  %v2616_v44 = vld [vmem:[%s3863_s3] ss:$0 sm:$0xff]  ;;  %v2621_v45 = vld [vmem:[%s3863_s3 + $0x3] ss:$0 sm:$0xff]  ;;  %s3379_s23 = scalar_lea.vmem %s3868_s8, %s2257_s11 }
  0x11   : > { %v2417_v1 = vld [vmem:[%s2414_s14] sm:$0xff]  ;;  %v2422_v2 = vld [vmem:[%s2414_s14 + $0x8] sm:$0xff]  ;;  %v2427_v3 = vld [vmem:[%s2414_s14 + $0x10] sm:$0xff]  ;;  %343 = vst.msk [vmem:[#allocation2 + $0x27] sm:$0x1] %vm342_vm3, %v2337_v14  ;;  %2261 = vmatpush.msrb.mxu3 %v1522_v39 }
  0x12   : > { %2150 = vmatmul.msk.f32.vlgmr.msra.gmra.mxu0 %vm412_vm1, %v2417_v1  ;;  %v2432_v4 = vld [vmem:[%s2414_s14 + $0x18] sm:$0xff]  ;;  %v2437_v5 = vld [vmem:[%s2414_s14 + $0x20] sm:$0xff]  ;;  %v2442_v6 = vld [vmem:[%s2414_s14 + $0x28] sm:$0xff]  ;;  %344 = vst.msk [vmem:[#allocation2 + $0x47] sm:$0x1] %vm342_vm3, %v2337_v14  ;;  %2223 = vmatmul.msk.f32.vlgmr.msra.gmra.mxu2 %vm412_vm1, %v2417_v1 }
  0x13   : > { %v2447_v7 = vld [vmem:[%s2414_s14 + $0x30] sm:$0xff]  ;;  %v2452_v8 = vld [vmem:[%s2414_s14 + $0x38] sm:$0xff]  ;;  %v2457_v9 = vld [vmem:[%s2414_s14 + $0x40] sm:$0xff]  ;;  %335 = vst.msk [vmem:[#allocation2 + $0x18] sm:$0xff] %vm331_vm2, %v2337_v14  ;;  %1639 = vmatpush.msra.mxu1 %v1521_v41  ;;  %2262 = vmatpush.msrb.mxu3 %v1521_v41 }
  0x14   : > { %v2462_v10 = vld [vmem:[%s2414_s14 + $0x48] sm:$0xff]  ;;  %v2467_v11 = vld [vmem:[%s2414_s14 + $0x50] sm:$0xff]  ;;  %v2472_v12 = vld [vmem:[%s2414_s14 + $0x58] sm:$0xff]  ;;  %337 = vst.msk [vmem:[#allocation2 + $0x220] sm:$0xff] %vm331_vm2, %v2337_v14 }
  0x15   : > { %v2477_v13 = vld [vmem:[%s2414_s14 + $0x60] sm:$0xff]  ;;  %v388_v15 = vld [vmem:[%s2414_s14 + $0x68] sm:$0xff]  ;;  %338 = vst.msk [vmem:[#allocation2 + $0x228] sm:$0xff] %vm331_vm2, %v2337_v14  ;;  %v389_v17 = vld [vmem:[%s2414_s14 + $0x70] sm:$0xff] }
  0x16   : > { %v400_v16 = vld [vmem:[%s2414_s14 + $0xc8] sm:$0xff]  ;;  %339 = vst.msk [vmem:[#allocation2 + $0x230] sm:$0xff] %vm331_vm2, %v2337_v14  ;;  %v401_v18 = vld [vmem:[%s2414_s14 + $0xd0] sm:$0xff]  ;;  %v390_v19 = vld [vmem:[%s2414_s14 + $0x78] sm:$0xff] }
  0x17   : > { %2175 = vmatmul.msk.f32.vlgmr.msra.gmra.mxu3 %vm412_vm1, %v400_v16  ;;  %340 = vst.msk [vmem:[#allocation2 + $0x238] sm:$0xff] %vm331_vm2, %v2337_v14  ;;  %v402_v21 = vld [vmem:[%s2414_s14 + $0xd8] sm:$0xff]  ;;  %v391_v23 = vld [vmem:[%s2414_s14 + $0x80] sm:$0xff]  ;;  %v392_v30 = vld [vmem:[%s2414_s14 + $0x88] sm:$0xff] }
  0x18   : > { %345 = vst.msk [vmem:[#allocation2 + $0x67] sm:$0x1] %vm342_vm3, %v2337_v14  ;;  %v403_v27 = vld [vmem:[%s2414_s14 + $0xe0] sm:$0xff]  ;;  %v404_v34 = vld [vmem:[%s2414_s14 + $0xe8] sm:$0xff]  ;;  %v393_v37 = vld [vmem:[%s2414_s14 + $0x90] sm:$0xff]  ;;  %2263 = vmatpush.msk.msra.mxu3 %vm509_vm0, %v1771_v28 }
  0x19   : > { %346 = vst.msk [vmem:[#allocation2 + $0x87] sm:$0x1] %vm342_vm3, %v2337_v14  ;;  %v405_v43 = vld [vmem:[%s2414_s14 + $0xf0] sm:$0xff]  ;;  %v394_v47 = vld [vmem:[%s2414_s14 + $0x98] sm:$0xff]  ;;  %v725_v48 = vld [vmem:[#allocation2 + $0x7] sm:$0xff] }
  0x1a   : > { %2151 = vmatmul.msk.f32.gmra.mxu0 %vm412_vm1, %v2422_v2  ;;  %347 = vst.msk [vmem:[#allocation2 + $0xa7] sm:$0x1] %vm342_vm3, %v2337_v14  ;;  %2224 = vmatmul.msk.f32.gmra.mxu2 %vm412_vm1, %v2422_v2  ;;  %v765_v52 = vmul.f32 %v2616_v44, %v725_v48  ;;  %v935_v55 = vld [vmem:[#allocation2 + $0x8] sm:$0xff]  ;;  %v2642_v57 = vld [vmem:[%s3863_s3 + $0x1] ss:$0 sm:$0xff]  ;;  %v406_v0 = vld [vmem:[%s2414_s14 + $0xf8] sm:$0xff] }
  0x1b   : > { %348 = vst.msk [vmem:[#allocation2 + $0xc7] sm:$0x1] %vm342_vm3, %v2337_v14  ;;  %v976_v61 = vmul.f32 %v2642_v57, %v935_v55  ;;  %v2653_v62 = vld [vmem:[%s3863_s3 + $0x4] ss:$0 sm:$0xff]  ;;  %v726_v63 = vld [vmem:[#allocation2 + $0xf] sm:$0xff] }
  0x1c   : > { %349 = vst.msk [vmem:[#allocation2 + $0xe7] sm:$0x1] %vm342_vm3, %v2337_v14  ;;  %v395_v2 = vld [vmem:[%s2414_s14 + $0xa0] sm:$0xff]  ;;  %v396_v41 = vld [vmem:[%s2414_s14 + $0xa8] sm:$0xff] }
  0x1d   : > { %350 = vst.msk [vmem:[#allocation2 + $0x107] sm:$0x1] %vm342_vm3, %v2337_v14 }
  0x1e   : > { %351 = vst.msk [vmem:[#allocation2 + $0x127] sm:$0x1] %vm342_vm3, %v2337_v14 }
  0x1f   : > { %2176 = vmatmul.msk.f32.gmra.mxu3 %vm412_vm1, %v401_v18  ;;  %352 = vst.msk [vmem:[#allocation2 + $0x147] sm:$0x1] %vm342_vm3, %v2337_v14 }
  0x20   : > { %353 = vst.msk [vmem:[#allocation2 + $0x167] sm:$0x1] %vm342_vm3, %v2337_v14 }
  0x21   : > { %354 = vst.msk [vmem:[#allocation2 + $0x187] sm:$0x1] %vm342_vm3, %v2337_v14 }
  0x22   : > { %2152 = vmatmul.msk.f32.gmra.mxu0 %vm412_vm1, %v2427_v3  ;;  %355 = vst.msk [vmem:[#allocation2 + $0x1a7] sm:$0x1] %vm342_vm3, %v2337_v14  ;;  %2225 = vmatmul.msk.f32.gmra.mxu2 %vm412_vm1, %v2427_v3 }
  0x23   : > { %356 = vst.msk [vmem:[#allocation2 + $0x1c7] sm:$0x1] %vm342_vm3, %v2337_v14 }
  0x24   : > { %357 = vst.msk [vmem:[#allocation2 + $0x1e7] sm:$0x1] %vm342_vm3, %v2337_v14 }
  0x25   : > { %358 = vst.msk [vmem:[#allocation2 + $0x207] sm:$0x1] %vm342_vm3, %v2337_v14 }
  0x26   : > { %359 = vst.msk [vmem:[#allocation2 + $0x38] sm:$0x1] %vm342_vm3, %v2337_v14 }
  0x27   : > { %2177 = vmatmul.msk.f32.gmra.mxu3 %vm412_vm1, %v402_v21  ;;  %360 = vst.msk [vmem:[#allocation2 + $0x58] sm:$0x1] %vm342_vm3, %v2337_v14  ;;  %v766_v21 = vmul.f32 %v2616_v44, %v726_v63 }
  0x28   : > { %361 = vst.msk [vmem:[#allocation2 + $0x78] sm:$0x1] %vm342_vm3, %v2337_v14 }
  0x29   : > { %362 = vst.msk [vmem:[#allocation2 + $0x98] sm:$0x1] %vm342_vm3, %v2337_v14 }
  0x2a   : > { %2153 = vmatmul.msk.f32.gmra.mxu0 %vm412_vm1, %v2432_v4  ;;  %363 = vst.msk [vmem:[#allocation2 + $0xb8] sm:$0x1] %vm342_vm3, %v2337_v14  ;;  %2226 = vmatmul.msk.f32.gmra.mxu2 %vm412_vm1, %v2432_v4 }
  0x2b   : > { %364 = vst.msk [vmem:[#allocation2 + $0xd8] sm:$0x1] %vm342_vm3, %v2337_v14 }
  0x2c   : > { %365 = vst.msk [vmem:[#allocation2 + $0xf8] sm:$0x1] %vm342_vm3, %v2337_v14 }
  0x2d   : > { %366 = vst.msk [vmem:[#allocation2 + $0x118] sm:$0x1] %vm342_vm3, %v2337_v14 }
  0x2e   : > { %367 = vst.msk [vmem:[#allocation2 + $0x138] sm:$0x1] %vm342_vm3, %v2337_v14 }
  0x2f   : > { %2178 = vmatmul.msk.f32.gmra.mxu3 %vm412_vm1, %v403_v27  ;;  %368 = vst.msk [vmem:[#allocation2 + $0x158] sm:$0x1] %vm342_vm3, %v2337_v14 }
  0x30   : > { %369 = vst.msk [vmem:[#allocation2 + $0x178] sm:$0x1] %vm342_vm3, %v2337_v14 }
  0x31   : > { %370 = vst.msk [vmem:[#allocation2 + $0x198] sm:$0x1] %vm342_vm3, %v2337_v14 }
  0x32   : > { %2154 = vmatmul.msk.f32.gmra.mxu0 %vm412_vm1, %v2437_v5  ;;  %371 = vst.msk [vmem:[#allocation2 + $0x1b8] sm:$0x1] %vm342_vm3, %v2337_v14  ;;  %2227 = vmatmul.msk.f32.gmra.mxu2 %vm412_vm1, %v2437_v5 }
  0x33   : > { %372 = vst.msk [vmem:[#allocation2 + $0x1d8] sm:$0x1] %vm342_vm3, %v2337_v14 }
  0x34   : > { %373 = vst.msk [vmem:[#allocation2 + $0x1f8] sm:$0x1] %vm342_vm3, %v2337_v14 }
  0x35   : > { %374 = vst.msk [vmem:[#allocation2 + $0x218] sm:$0x1] %vm342_vm3, %v2337_v14 }
  0x37   : > { %2179 = vmatmul.msk.f32.gmra.mxu3 %vm412_vm1, %v404_v34 }
  0x3a   : > { %2155 = vmatmul.msk.f32.gmra.mxu0 %vm412_vm1, %v2442_v6  ;;  %2228 = vmatmul.msk.f32.gmra.mxu2 %vm412_vm1, %v2442_v6 }
  0x3f   : > { %2180 = vmatmul.msk.f32.gmra.mxu3 %vm412_vm1, %v405_v43 }
  0x42   : > { %2156 = vmatmul.msk.f32.gmra.mxu0 %vm412_vm1, %v2447_v7  ;;  %2229 = vmatmul.msk.f32.gmra.mxu2 %vm412_vm1, %v2447_v7 }
  0x47   : > { %2181 = vmatmul.msk.f32.gmra.mxu3 %vm412_vm1, %v406_v0 }
  0x4a   : > { %2157 = vmatmul.msk.f32.gmra.mxu0 %vm412_vm1, %v2452_v8  ;;  %2230 = vmatmul.msk.f32.gmra.mxu2 %vm412_vm1, %v2452_v8 }
  0x52   : > { %2158 = vmatmul.msk.f32.gmra.mxu0 %vm412_vm1, %v2457_v9  ;;  %2231 = vmatmul.msk.f32.gmra.mxu2 %vm412_vm1, %v2457_v9 }
  0x5a   : > { %2159 = vmatmul.msk.f32.gmra.mxu0 %vm412_vm1, %v2462_v10  ;;  %2232 = vmatmul.msk.f32.gmra.mxu2 %vm412_vm1, %v2462_v10 }
  0x62   : > { %2160 = vmatmul.msk.f32.gmra.mxu0 %vm412_vm1, %v2467_v11  ;;  %2233 = vmatmul.msk.f32.gmra.mxu2 %vm412_vm1, %v2467_v11 }
  0x6a   : > { %2161 = vmatmul.msk.f32.gmra.mxu0 %vm412_vm1, %v2472_v12  ;;  %2234 = vmatmul.msk.f32.gmra.mxu2 %vm412_vm1, %v2472_v12 }
  0x72   : > { %2162 = vmatmul.msk.f32.gmra.mxu0 %vm412_vm1, %v2477_v13  ;;  %2235 = vmatmul.msk.f32.gmra.mxu2 %vm412_vm1, %v2477_v13 }
  0x7a   : > { %2163 = vmatmul.msk.f32.gmra.mxu0 %vm412_vm1, %v388_v15 }
  0x82   : > { %2164 = vmatmul.msk.f32.gmra.mxu0 %vm412_vm1, %v389_v17  ;;  %v2666_v17 = vld [vmem:[%s3863_s3 + $0x7] ss:$0 sm:$0xff] }
  0x8a   : > { %2165 = vmatmul.msk.f32.gmra.mxu0 %vm412_vm1, %v390_v19  ;;  %v1178_v19 = vld [vmem:[#allocation2 + $0x9] sm:$0xff] }
  0x8f   : > { %v530_v22 = vpop.f32.mrf.mxu0 }
  0x90   : > { %v531_v24 = vadd.f32 %v2536_v20, %v530_v22 }
  0x92   : > { %v626_v25 = vmax.f32 %v531_v24, 0.0  ;;  %2166 = vmatmul.msk.f32.gmra.mxu0 %vm412_vm1, %v391_v23 }
  0x94   : > { %v658_v26 = vmin.f32 %v626_v25, 6.0  ;;  %v2679_v25 = vld [vmem:[%s3863_s3 + $0x2] ss:$0 sm:$0xff] }
  0x96   : > { %690 = vst.msk [vmem:[#allocation2 + $0x28] sm:$0xff] %vm331_vm2, %v658_v26  ;;  %v936_v26 = vld [vmem:[#allocation2 + $0x10] sm:$0xff] }
  0x97   : > { %v533_v29 = vpop.f32.mrf.mxu0  ;;  %v977_v39 = vmul.f32 %v2642_v57, %v936_v26  ;;  %v397_v26 = vld [vmem:[%s2414_s14 + $0xb0] sm:$0xff] }
  0x98   : > { %v534_v31 = vadd.f32 %v2536_v20, %v533_v29 }
  0x9a   : > { %v627_v32 = vmax.f32 %v534_v31, 0.0  ;;  %2167 = vmatmul.msk.f32.gmra.mxu0 %vm412_vm1, %v392_v30  ;;  %v1219_v30 = vmul.f32 %v2679_v25, %v1178_v19  ;;  %v2689_v31 = vld [vmem:[%s3863_s3 + $0x5] ss:$0 sm:$0xff] }
  0x9c   : > { %v659_v33 = vmin.f32 %v627_v32, 6.0 }
  0x9d   : > { %v2625_v49 = vld [vmem:[#allocation2 + $0x27] sm:$0xff] }
  0x9e   : > { %691 = vst.msk [vmem:[#allocation2 + $0x30] sm:$0xff] %vm331_vm2, %v659_v33  ;;  %v802_v53 = vmul.f32 %v2621_v45, %v2625_v49  ;;  %v2657_v3 = vld [vmem:[#allocation2 + $0x28] sm:$0xff]  ;;  %v767_v63 = vmul.f32 %v2616_v44, %v2625_v49 }
  0x9f   : > { %v536_v36 = vpop.f32.mrf.mxu0  ;;  %v1045_v24 = vmul.f32 %v2653_v62, %v2657_v3 }
  0xa0   : > { %v537_v38 = vadd.f32 %v2536_v20, %v536_v36  ;;  %v834_v59 = vadd.f32 %v802_v53, %v765_v52 }
  0xa2   : > { %v628_v40 = vmax.f32 %v537_v38, 0.0  ;;  %2168 = vmatmul.msk.f32.gmra.mxu0 %vm412_vm1, %v393_v37 }
  0xa4   : > { %v660_v42 = vmin.f32 %v628_v40, 6.0 }
  0xa5   : > { %v2659_v14 = vld [vmem:[#allocation2 + $0x2f] sm:$0xff] }
  0xa6   : > { %692 = vst.msk [vmem:[#allocation2 + $0x48] sm:$0xff] %vm331_vm2, %v660_v42  ;;  %v803_v4 = vmul.f32 %v2621_v45, %v2659_v14  ;;  %v2691_v32 = vld [vmem:[#allocation2 + $0x29] sm:$0xff]  ;;  %v768_v6 = vmul.f32 %v2616_v44, %v2659_v14 }
  0xa7   : > { %v539_v46 = vpop.f32.mrf.mxu0  ;;  %v2703_v38 = vld [vmem:[#allocation2 + $0x30] sm:$0xff] }
  0xa8   : > { %v540_v50 = vadd.f32 %v2536_v20, %v539_v46  ;;  %v835_v36 = vadd.f32 %v803_v4, %v766_v21  ;;  %v1046_v52 = vmul.f32 %v2653_v62, %v2703_v38 }
  0xaa   : > { %v629_v51 = vmax.f32 %v540_v50, 0.0  ;;  %2169 = vmatmul.msk.f32.gmra.mxu0 %vm412_vm1, %v394_v47  ;;  %v1288_v47 = vmul.f32 %v2689_v31, %v2691_v32  ;;  %v1179_v50 = vld [vmem:[#allocation2 + $0x11] sm:$0xff] }
  0xac   : > { %v661_v56 = vmin.f32 %v629_v51, 6.0 }
  0xad   : > { %v2644_v58 = vld [vmem:[#allocation2 + $0x47] sm:$0xff] }
  0xae   : > { %693 = vst.msk [vmem:[#allocation2 + $0x50] sm:$0xff] %vm331_vm2, %v661_v56  ;;  %v871_v60 = vmul.f32 %v2637_v54, %v2644_v58  ;;  %v2670_v18 = vld [vmem:[#allocation2 + $0x48] sm:$0xff]  ;;  %v804_v53 = vmul.f32 %v2621_v45, %v2644_v58  ;;  %v769_v7 = vmul.f32 %v2616_v44, %v2644_v58 }
  0xaf   : > { %v542_v1 = vpop.f32.mrf.mxu0  ;;  %v1114_v29 = vmul.f32 %v2666_v17, %v2670_v18 }
  0xb0   : > { %v543_v15 = vadd.f32 %v2536_v20, %v542_v1  ;;  %v903_v16 = vadd.f32 %v871_v60, %v834_v59  ;;  %v2726_v60 = vld [vmem:[%s3864_s4] ss:$0 sm:$0xff] }
  0xb2   : > { %v630_v22 = vmax.f32 %v543_v15, 0.0  ;;  %2170 = vmatmul.msk.f32.gmra.mxu0 %vm412_vm1, %v395_v2  ;;  %v1008_v23 = vadd.f32 %v976_v61, %v903_v16  ;;  %v1220_v61 = vmul.f32 %v2679_v25, %v1179_v50  ;;  %v2733_v16 = vld [vmem:[#allocation2 + $0x31] sm:$0xff] }
  0xb4   : > { %v662_v27 = vmin.f32 %v630_v22, 6.0  ;;  %v1077_v28 = vadd.f32 %v1045_v24, %v1008_v23  ;;  %v836_v24 = vadd.f32 %v804_v53, %v767_v63 }
  0xb5   : > { %v2693_v33 = vld [vmem:[#allocation2 + $0x4f] sm:$0xff] }
  0xb6   : > { %694 = vst.msk [vmem:[#allocation2 + $0x68] sm:$0xff] %vm331_vm2, %v662_v27  ;;  %v1146_v34 = vadd.f32 %v1114_v29, %v1077_v28  ;;  %v872_v37 = vmul.f32 %v2637_v54, %v2693_v33  ;;  %v2707_v42 = vld [vmem:[#allocation2 + $0x49] sm:$0xff]  ;;  %v2739_v23 = vld [vmem:[#allocation2 + $0x51] sm:$0xff]  ;;  %v1289_v27 = vmul.f32 %v2689_v31, %v2733_v16  ;;  %v978_v28 = vmul.f32 %v2642_v57, %v2657_v3 }
  0xb7   : > { %v545_v40 = vpop.f32.mrf.mxu0  ;;  %v2714_v51 = vld [vmem:[#allocation2 + $0x50] sm:$0xff]  ;;  %v1357_v59 = vmul.f32 %v2699_v35, %v2707_v42  ;;  %v770_v8 = vmul.f32 %v2616_v44, %v2693_v33 }
  0xb8   : > { %v546_v43 = vadd.f32 %v2536_v20, %v545_v40  ;;  %v1251_v46 = vadd.f32 %v1219_v30, %v1146_v34  ;;  %v904_v48 = vadd.f32 %v872_v37, %v835_v36  ;;  %v1115_v15 = vmul.f32 %v2666_v17, %v2714_v51 }
  0xb9   : > { %v1358_v37 = vmul.f32 %v2699_v35, %v2739_v23  ;;  %v1047_v40 = vmul.f32 %v2653_v62, %v2670_v18 }
  0xba   : > { %v631_v55 = vmax.f32 %v546_v43, 0.0  ;;  %2171 = vmatmul.msk.f32.gmra.mxu0 %vm412_vm1, %v396_v41  ;;  %v1320_v56 = vadd.f32 %v1288_v47, %v1251_v46  ;;  %v1009_v5 = vadd.f32 %v977_v39, %v904_v48  ;;  %v805_v41 = vmul.f32 %v2621_v45, %v2693_v33 }
  0xbc   : > { %v663_v0 = vmin.f32 %v631_v55, 6.0  ;;  %v1389_v1 = vadd.f32 %v1357_v59, %v1320_v56  ;;  %v1078_v2 = vadd.f32 %v1046_v52, %v1009_v5  ;;  %v1221_v55 = vmul.f32 %v2679_v25, %v2691_v32 }
  0xbd   : > { %v2735_v19 = vld [vmem:[#allocation2 + $0x67] sm:$0xff]  ;;  %v837_v14 = vadd.f32 %v805_v41, %v768_v6  ;;  %v979_v32 = vmul.f32 %v2642_v57, %v2703_v38  ;;  %v1222_v41 = vmul.f32 %v2679_v25, %v2733_v16  ;;  %v980_v16 = vmul.f32 %v2642_v57, %v2670_v18 }
  0xbe   : > { %695 = vst.msk [vmem:[#allocation2 + $0x70] sm:$0xff] %vm331_vm2, %v663_v0  ;;  %v1425_v21 = vadd.f32 %v2726_v60, %v1389_v1  ;;  %v1147_v22 = vadd.f32 %v1115_v15, %v1078_v2  ;;  %v873_v49 = vmul.f32 %v2637_v54, %v2735_v19  ;;  %v2753_v39 = vld [vmem:[#allocation2 + $0x68] sm:$0xff]  ;;  %v398_v1 = vld [vmem:[%s2414_s14 + $0xb8] sm:$0xff]  ;;  %v1290_v2 = vmul.f32 %v2689_v31, %v2707_v42 }
  0xbf   : > { %v548_v4 = vpop.f32.mrf.mxu0  ;;  %v1116_v53 = vmul.f32 %v2666_v17, %v2753_v39 }
  0xc0   : > { %v549_v29 = vadd.f32 %v2536_v20, %v548_v4  ;;  %v1457_v30 = vmax.f32 %v1425_v21, 0.0  ;;  %v1252_v34 = vadd.f32 %v1220_v61, %v1147_v22  ;;  %v905_v36 = vadd.f32 %v873_v49, %v836_v24 }
  0xc2   : > { %v632_v3 = vmax.f32 %v549_v29, 0.0  ;;  %2172 = vmatmul.msk.f32.gmra.mxu0 %vm412_vm1, %v397_v26  ;;  %v1489_v43 = vmin.f32 %v1457_v30, 6.0  ;;  %v1321_v46 = vadd.f32 %v1289_v27, %v1252_v34  ;;  %v1010_v47 = vadd.f32 %v978_v28, %v905_v36 }
  0xc3   : > { %v1048_v26 = vmul.f32 %v2653_v62, %v2714_v51  ;;  %v806_v27 = vmul.f32 %v2621_v45, %v2735_v19 }
  0xc4   : > { %v664_v48 = vmin.f32 %v632_v3, 6.0  ;;  %2190 = vmatmul.msk.f32.vlgmr.msra.gmra.mxu1 %vm331_vm2, %v1489_v43  ;;  %v1390_v50 = vadd.f32 %v1358_v37, %v1321_v46  ;;  %v1079_v52 = vadd.f32 %v1047_v40, %v1010_v47 }
  0xc5   : > { %v2767_v56 = vld [vmem:[#allocation2 + $0x6f] sm:$0xff]  ;;  %v838_v58 = vadd.f32 %v806_v27, %v769_v7 }
  0xc6   : > { %696 = vst.msk [vmem:[#allocation2 + $0x88] sm:$0xff] %vm331_vm2, %v664_v48  ;;  %v1426_v59 = vadd.f32 %v2726_v60, %v1390_v50  ;;  %v1148_v5 = vadd.f32 %v1116_v53, %v1079_v52  ;;  %v2771_v61 = vld [vmem:[#allocation2 + $0x69] sm:$0xff]  ;;  %v874_v63 = vmul.f32 %v2637_v54, %v2767_v56  ;;  %v2803_v47 = vld [vmem:[#allocation2 + $0x71] sm:$0xff]  ;;  %v399_v50 = vld [vmem:[%s2414_s14 + $0xc0] sm:$0xff]  ;;  %v1291_v52 = vmul.f32 %v2689_v31, %v2739_v23 }
  0xc7   : > { %v551_v0 = vpop.f32.mrf.mxu0  ;;  %v1359_v49 = vmul.f32 %v2699_v35, %v2771_v61  ;;  %v2785_v4 = vld [vmem:[#allocation2 + $0x70] sm:$0xff] }
  0xc8   : > { %v552_v15 = vadd.f32 %v2536_v20, %v551_v0  ;;  %v1458_v21 = vmax.f32 %v1426_v59, 0.0  ;;  %v1253_v22 = vadd.f32 %v1221_v55, %v1148_v5  ;;  %v906_v24 = vadd.f32 %v874_v63, %v837_v14 }
  0xc9   : > { %v1117_v40 = vmul.f32 %v2666_v17, %v2785_v4  ;;  %v1360_v14 = vmul.f32 %v2699_v35, %v2803_v47  ;;  %v1049_v0 = vmul.f32 %v2653_v62, %v2753_v39 }
  0xca   : > { %v633_v38 = vmax.f32 %v552_v15, 0.0  ;;  %2173 = vmatmul.msk.f32.gmra.mxu0 %vm412_vm1, %v398_v1  ;;  %v1490_v28 = vmin.f32 %v1458_v21, 6.0  ;;  %v1322_v29 = vadd.f32 %v1290_v2, %v1253_v22  ;;  %v1011_v30 = vadd.f32 %v979_v32, %v906_v24 }
  0xcb   : > { %v807_v1 = vmul.f32 %v2621_v45, %v2767_v56 }
  0xcc   : > { %v665_v34 = vmin.f32 %v633_v38, 6.0  ;;  %2191 = vmatmul.msk.f32.gmra.mxu1 %vm331_vm2, %v1490_v28  ;;  %v1391_v36 = vadd.f32 %v1359_v49, %v1322_v29  ;;  %v1080_v37 = vadd.f32 %v1048_v26, %v1011_v30  ;;  %v1223_v26 = vmul.f32 %v2679_v25, %v2707_v42 }
  0xcd   : > { %v2799_v3 = vld [vmem:[#allocation2 + $0x87] sm:$0xff]  ;;  %v839_v33 = vadd.f32 %v807_v1, %v770_v8  ;;  %v981_v42 = vmul.f32 %v2642_v57, %v2714_v51 }
  0xce   : > { %697 = vst.msk [vmem:[#allocation2 + $0x90] sm:$0xff] %vm331_vm2, %v665_v34  ;;  %v1427_v43 = vadd.f32 %v2726_v60, %v1391_v36  ;;  %v1149_v46 = vadd.f32 %v1117_v40, %v1080_v37  ;;  %v875_v6 = vmul.f32 %v2637_v54, %v2799_v3  ;;  %v2817_v63 = vld [vmem:[#allocation2 + $0x88] sm:$0xff]  ;;  %v1292_v34 = vmul.f32 %v2689_v31, %v2771_v61 }
  0xcf   : > { %v554_v48 = vpop.f32.mrf.mxu0  ;;  %v1118_v49 = vmul.f32 %v2666_v17, %v2817_v63 }
  0xd0   : > { %v555_v53 = vadd.f32 %v2536_v20, %v554_v48  ;;  %v1459_v55 = vmax.f32 %v1427_v43, 0.0  ;;  %v1254_v59 = vadd.f32 %v1222_v41, %v1149_v46  ;;  %v907_v5 = vadd.f32 %v875_v6, %v838_v58 }
  0xd1   : > { %v1050_v58 = vmul.f32 %v2653_v62, %v2785_v4  ;;  %v808_v6 = vmul.f32 %v2621_v45, %v2799_v3 }
  0xd2   : > { %v634_v18 = vmax.f32 %v555_v53, 0.0  ;;  %2174 = vmatmul.msk.f32.gmra.mxu0 %vm412_vm1, %v399_v50  ;;  %v1491_v2 = vmin.f32 %v1459_v55, 6.0  ;;  %v1323_v32 = vadd.f32 %v1291_v52, %v1254_v59  ;;  %v1012_v15 = vadd.f32 %v980_v16, %v907_v5 }
  0xd3   : > { %v771_v16 = vmul.f32 %v2616_v44, %v2735_v19  ;;  %v1224_v5 = vmul.f32 %v2679_v25, %v2739_v23  ;;  %v982_v23 = vmul.f32 %v2642_v57, %v2753_v39 }
  0xd4   : > { %v666_v21 = vmin.f32 %v634_v18, 6.0  ;;  %2192 = vmatmul.msk.f32.gmra.mxu1 %vm331_vm2, %v1491_v2  ;;  %v1392_v22 = vadd.f32 %v1360_v14, %v1323_v32  ;;  %v1081_v24 = vadd.f32 %v1049_v0, %v1012_v15  ;;  %v1293_v15 = vmul.f32 %v2689_v31, %v2803_v47 }
  0xd5   : > { %v2831_v27 = vld [vmem:[#allocation2 + $0x8f] sm:$0xff]  ;;  %v840_v19 = vadd.f32 %v808_v6, %v771_v16 }
  0xd6   : > { %698 = vst.msk [vmem:[#allocation2 + $0xa8] sm:$0xff] %vm331_vm2, %v666_v21  ;;  %v1428_v38 = vadd.f32 %v2726_v60, %v1392_v22  ;;  %v1150_v28 = vadd.f32 %v1118_v49, %v1081_v24  ;;  %v2835_v29 = vld [vmem:[#allocation2 + $0x89] sm:$0xff]  ;;  %v876_v30 = vmul.f32 %v2637_v54, %v2831_v27  ;;  %v2865_v18 = vld [vmem:[#allocation2 + $0x91] sm:$0xff] }
  0xd7   : > { %v557_v7 = vpop.f32.mrf.mxu0  ;;  %v1361_v43 = vmul.f32 %v2699_v35, %v2835_v29  ;;  %v2848_v46 = vld [vmem:[#allocation2 + $0x90] sm:$0xff]  ;;  %v1362_v49 = vmul.f32 %v2699_v35, %v2865_v18 }
  0xd8   : > { %v558_v36 = vadd.f32 %v2536_v20, %v557_v7  ;;  %v1460_v37 = vmax.f32 %v1428_v38, 0.0  ;;  %v1255_v40 = vadd.f32 %v1223_v26, %v1150_v28  ;;  %v908_v41 = vadd.f32 %v876_v30, %v839_v33 }
  0xd9   : > { %v1119_v59 = vmul.f32 %v2666_v17, %v2848_v46  ;;  %v1051_v38 = vmul.f32 %v2653_v62, %v2817_v63  ;;  %v809_v28 = vmul.f32 %v2621_v45, %v2831_v27 }
  0xda   : > { %v635_v51 = vmax.f32 %v558_v36, 0.0  ;;  %v1492_v48 = vmin.f32 %v1460_v37, 6.0  ;;  %v1324_v50 = vadd.f32 %v1292_v34, %v1255_v40  ;;  %v1013_v52 = vadd.f32 %v981_v42, %v908_v41 }
  0xdb   : > { %v772_v34 = vmul.f32 %v2616_v44, %v2767_v56  ;;  %v1225_v40 = vmul.f32 %v2679_v25, %v2771_v61  ;;  %v983_v61 = vmul.f32 %v2642_v57, %v2785_v4 }
  0xdc   : > { %v667_v53 = vmin.f32 %v635_v51, 6.0  ;;  %2193 = vmatmul.msk.f32.gmra.mxu1 %vm331_vm2, %v1492_v48  ;;  %v1393_v9 = vadd.f32 %v1361_v43, %v1324_v50  ;;  %v1082_v55 = vadd.f32 %v1050_v58, %v1013_v52  ;;  %v1294_v50 = vmul.f32 %v2689_v31, %v2835_v29 }
  0xdd   : > { %v2861_v14 = vld [vmem:[#allocation2 + $0xa7] sm:$0xff]  ;;  %v841_v56 = vadd.f32 %v809_v28, %v772_v34 }
  0xde   : > { %699 = vst.msk [vmem:[#allocation2 + $0xb0] sm:$0xff] %vm331_vm2, %v667_v53  ;;  %v1429_v0 = vadd.f32 %v2726_v60, %v1393_v9  ;;  %v1151_v1 = vadd.f32 %v1119_v59, %v1082_v55  ;;  %v877_v2 = vmul.f32 %v2637_v54, %v2861_v14  ;;  %v2878_v26 = vld [vmem:[#allocation2 + $0xa8] sm:$0xff] }
  0xdf   : > { %v560_v32 = vpop.f32.mrf.mxu0  ;;  %v1120_v37 = vmul.f32 %v2666_v17, %v2878_v26 }
  0xe0   : > { %v561_v8 = vadd.f32 %v2536_v20, %v560_v32  ;;  %v1461_v21 = vmax.f32 %v1429_v0, 0.0  ;;  %v1256_v22 = vadd.f32 %v1224_v5, %v1151_v1  ;;  %v909_v24 = vadd.f32 %v877_v2, %v840_v19 }
  0xe1   : > { %v1052_v5 = vmul.f32 %v2653_v62, %v2848_v46  ;;  %v810_v0 = vmul.f32 %v2621_v45, %v2861_v14  ;;  %v773_v32 = vmul.f32 %v2616_v44, %v2799_v3 }
  0xe2   : > { %v636_v39 = vmax.f32 %v561_v8, 0.0  ;;  %v1493_v33 = vmin.f32 %v1461_v21, 6.0  ;;  %v1325_v30 = vadd.f32 %v1293_v15, %v1256_v22  ;;  %v1014_v7 = vadd.f32 %v982_v23, %v909_v24 }
  0xe3   : > { %v1226_v21 = vmul.f32 %v2679_v25, %v2803_v47  ;;  %v842_v3 = vadd.f32 %v810_v0, %v773_v32  ;;  %v984_v47 = vmul.f32 %v2642_v57, %v2817_v63 }
  0xe4   : > { %v668_v42 = vmin.f32 %v636_v39, 6.0  ;;  %2194 = vmatmul.msk.f32.gmra.mxu1 %vm331_vm2, %v1493_v33  ;;  %v1394_v10 = vadd.f32 %v1362_v49, %v1325_v30  ;;  %v1083_v36 = vadd.f32 %v1051_v38, %v1014_v7  ;;  %v1295_v33 = vmul.f32 %v2689_v31, %v2865_v18 }
  0xe5   : > { %v2891_v41 = vld [vmem:[#allocation2 + $0xaf] sm:$0xff] }
  0xe6   : > { %700 = vst.msk [vmem:[#allocation2 + $0xc8] sm:$0xff] %vm331_vm2, %v668_v42  ;;  %v1430_v43 = vadd.f32 %v2726_v60, %v1394_v10  ;;  %v1152_v58 = vadd.f32 %v1120_v37, %v1083_v36  ;;  %v2895_v6 = vld [vmem:[#allocation2 + $0xa9] sm:$0xff]  ;;  %v878_v51 = vmul.f32 %v2637_v54, %v2891_v41  ;;  %v2925_v38 = vld [vmem:[#allocation2 + $0xb1] sm:$0xff]  ;;  %v1053_v37 = vmul.f32 %v2653_v62, %v2878_v26 }
  0xe7   : > { %v563_v48 = vpop.f32.mrf.mxu0  ;;  %v1363_v55 = vmul.f32 %v2699_v35, %v2895_v6  ;;  %v2908_v59 = vld [vmem:[#allocation2 + $0xb0] sm:$0xff]  ;;  %v1364_v10 = vmul.f32 %v2699_v35, %v2925_v38 }
  0xe8   : > { %v564_v52 = vadd.f32 %v2536_v20, %v563_v48  ;;  %v1462_v16 = vmax.f32 %v1430_v43, 0.0  ;;  %v1257_v53 = vadd.f32 %v1225_v40, %v1152_v58  ;;  %v910_v9 = vadd.f32 %v878_v51, %v841_v56 }
  0xe9   : > { %v1121_v8 = vmul.f32 %v2666_v17, %v2908_v59  ;;  %v811_v40 = vmul.f32 %v2621_v45, %v2891_v41  ;;  %v774_v51 = vmul.f32 %v2616_v44, %v2831_v27 }
  0xea   : > { %v637_v4 = vmax.f32 %v564_v52, 0.0  ;;  %v1494_v1 = vmin.f32 %v1462_v16, 6.0  ;;  %v1326_v19 = vadd.f32 %v1294_v50, %v1257_v53  ;;  %v1015_v2 = vadd.f32 %v983_v61, %v910_v9 }
  0xeb   : > { %v1227_v52 = vmul.f32 %v2679_v25, %v2835_v29  ;;  %v843_v27 = vadd.f32 %v811_v40, %v774_v51  ;;  %v985_v29 = vmul.f32 %v2642_v57, %v2848_v46  ;;  %v1297_v40 = vmul.f32 %v2689_v31, %v2925_v38 }
  0xec   : > { %v669_v15 = vmin.f32 %v637_v4, 6.0  ;;  %2195 = vmatmul.msk.f32.gmra.mxu1 %vm331_vm2, %v1494_v1  ;;  %v1395_v11 = vadd.f32 %v1363_v55, %v1326_v19  ;;  %v1084_v23 = vadd.f32 %v1052_v5, %v1015_v2  ;;  %v1296_v4 = vmul.f32 %v2689_v31, %v2895_v6 }
  0xed   : > { %v2921_v22 = vld [vmem:[#allocation2 + $0xc7] sm:$0xff] }
  0xee   : > { %701 = vst.msk [vmem:[#allocation2 + $0xd0] sm:$0xff] %vm331_vm2, %v669_v15  ;;  %v1431_v24 = vadd.f32 %v2726_v60, %v1395_v11  ;;  %v1153_v49 = vadd.f32 %v1121_v8, %v1084_v23  ;;  %v879_v28 = vmul.f32 %v2637_v54, %v2921_v22  ;;  %v2938_v36 = vld [vmem:[#allocation2 + $0xc8] sm:$0xff]  ;;  %v1054_v23 = vmul.f32 %v2653_v62, %v2908_v59 }
  0xef   : > { %v566_v39 = vpop.f32.mrf.mxu0  ;;  %v1122_v61 = vmul.f32 %v2666_v17, %v2938_v36  ;;  %v812_v8 = vmul.f32 %v2621_v45, %v2921_v22 }
  0xf0   : > { %v567_v30 = vadd.f32 %v2536_v20, %v566_v39  ;;  %v1463_v7 = vmax.f32 %v1431_v24, 0.0  ;;  %v1258_v34 = vadd.f32 %v1226_v21, %v1153_v49  ;;  %v911_v42 = vadd.f32 %v879_v28, %v842_v3 }
  0xf1   : > { %v775_v3 = vmul.f32 %v2616_v44, %v2861_v14 }
  0xf2   : > { %v638_v63 = vmax.f32 %v567_v30, 0.0  ;;  %v1495_v43 = vmin.f32 %v1463_v7, 6.0  ;;  %v1327_v58 = vadd.f32 %v1295_v33, %v1258_v34  ;;  %v1016_v56 = vadd.f32 %v984_v47, %v911_v42 }
  0xf3   : > { %v1228_v47 = vmul.f32 %v2679_v25, %v2865_v18  ;;  %v844_v14 = vadd.f32 %v812_v8, %v775_v3  ;;  %v986_v18 = vmul.f32 %v2642_v57, %v2878_v26  ;;  %v605_v8 = vpop.f32.mrf.mxu3 }
  0xf4   : > { %v670_v48 = vmin.f32 %v638_v63, 6.0  ;;  %2196 = vmatmul.msk.f32.gmra.mxu1 %vm331_vm2, %v1495_v43  ;;  %v1396_v12 = vadd.f32 %v1364_v10, %v1327_v58  ;;  %v1085_v50 = vadd.f32 %v1053_v37, %v1016_v56 }
  0xf5   : > { %v2951_v16 = vld [vmem:[#allocation2 + $0xcf] sm:$0xff] }
  0xf6   : > { %702 = vst.msk [vmem:[#allocation2 + $0xe8] sm:$0xff] %vm331_vm2, %v670_v48  ;;  %v1432_v53 = vadd.f32 %v2726_v60, %v1396_v12  ;;  %v1154_v9 = vadd.f32 %v1122_v61, %v1085_v50  ;;  %v2955_v55 = vld [vmem:[#allocation2 + $0xc9] sm:$0xff]  ;;  %v880_v5 = vmul.f32 %v2637_v54, %v2951_v16  ;;  %v2985_v42 = vld [vmem:[#allocation2 + $0xd1] sm:$0xff]  ;;  %v1055_v12 = vmul.f32 %v2653_v62, %v2938_v36 }
  0xf7   : > { %v569_v0 = vpop.f32.mrf.mxu0  ;;  %v1365_v15 = vmul.f32 %v2699_v35, %v2955_v55  ;;  %v2968_v11 = vld [vmem:[#allocation2 + $0xd0] sm:$0xff]  ;;  %v1366_v51 = vmul.f32 %v2699_v35, %v2985_v42  ;;  %v813_v50 = vmul.f32 %v2621_v45, %v2951_v16 }
  0xf8   : > { %v570_v1 = vadd.f32 %v2536_v20, %v569_v0  ;;  %v1464_v19 = vmax.f32 %v1432_v53, 0.0  ;;  %v1259_v2 = vadd.f32 %v1227_v52, %v1154_v9  ;;  %v912_v32 = vadd.f32 %v880_v5, %v843_v27 }
  0xf9   : > { %v1123_v33 = vmul.f32 %v2666_v17, %v2968_v11  ;;  %v776_v9 = vmul.f32 %v2616_v44, %v2891_v41 }
  0xfa   : > { %v639_v46 = vmax.f32 %v570_v1, 0.0  ;;  %v1496_v21 = vmin.f32 %v1464_v19, 6.0  ;;  %v1328_v24 = vadd.f32 %v1296_v4, %v1259_v2  ;;  %v1017_v49 = vadd.f32 %v985_v29, %v912_v32  ;;  %v1752_v29 = vld [vmem:[%s2414_s14 + $0x68] sm:$0xff] }
  0xfb   : > { %v1229_v1 = vmul.f32 %v2679_v25, %v2895_v6  ;;  %2236 = vmatmul.msk.f32.gmra.mxu2 %vm412_vm1, %v1752_v29  ;;  %v1298_v6 = vmul.f32 %v2689_v31, %v2955_v55 }
  0xfc   : > { %v671_v28 = vmin.f32 %v639_v46, 6.0  ;;  %2197 = vmatmul.msk.f32.gmra.mxu1 %vm331_vm2, %v1496_v21  ;;  %v1397_v13 = vadd.f32 %v1365_v15, %v1328_v24  ;;  %v1086_v39 = vadd.f32 %v1054_v23, %v1017_v49  ;;  %v845_v15 = vadd.f32 %v813_v50, %v776_v9  ;;  %v608_v9 = vpop.f32.mrf.mxu3 }
  0xfd   : > { %v2981_v30 = vld [vmem:[#allocation2 + $0xe7] sm:$0xff]  ;;  %v987_v21 = vmul.f32 %v2642_v57, %v2908_v59  ;;  %v606_v24 = vadd.f32 %v2536_v20, %v605_v8 }
  0xfe   : > { %703 = vst.msk [vmem:[#allocation2 + $0xf0] sm:$0xff] %vm331_vm2, %v671_v28  ;;  %v1433_v7 = vadd.f32 %v2726_v60, %v1397_v13  ;;  %v1155_v34 = vadd.f32 %v1123_v33, %v1086_v39  ;;  %v881_v10 = vmul.f32 %v2637_v54, %v2981_v30  ;;  %v2996_v48 = vld [vmem:[#allocation2 + $0xe8] sm:$0xff]  ;;  %v814_v59 = vmul.f32 %v2621_v45, %v2981_v30 }
  0xff   : > { %v572_v37 = vpop.f32.mrf.mxu0  ;;  %v1124_v4 = vmul.f32 %v2666_v17, %v2996_v48 }
 0x100   : > { %v573_v63 = vadd.f32 %v2536_v20, %v572_v37  ;;  %v1465_v43 = vmax.f32 %v1433_v7, 0.0  ;;  %v1260_v58 = vadd.f32 %v1228_v47, %v1155_v34  ;;  %v913_v56 = vadd.f32 %v881_v10, %v844_v14 }
 0x101   : > { %v1056_v47 = vmul.f32 %v2653_v62, %v2968_v11  ;;  %v651_v7 = vmax.f32 %v606_v24, 0.0 }
 0x102   : > { %v640_v61 = vmax.f32 %v573_v63, 0.0  ;;  %v1497_v52 = vmin.f32 %v1465_v43, 6.0  ;;  %v1329_v26 = vadd.f32 %v1297_v40, %v1260_v58  ;;  %v1018_v53 = vadd.f32 %v986_v18, %v913_v56 }
 0x103   : > { %v683_v40 = vmin.f32 %v651_v7, 6.0  ;;  %v777_v18 = vmul.f32 %v2616_v44, %v2921_v22  ;;  %v1754_v7 = vld [vmem:[%s2414_s14 + $0x78] sm:$0xff] }
 0x104   : > { %v672_v27 = vmin.f32 %v640_v61, 6.0  ;;  %2198 = vmatmul.msk.f32.gmra.mxu1 %vm331_vm2, %v1497_v52  ;;  %v1398_v5 = vadd.f32 %v1366_v51, %v1329_v26  ;;  %v1087_v0 = vadd.f32 %v1055_v12, %v1018_v53  ;;  %v1753_v51 = vld [vmem:[%s2414_s14 + $0x70] sm:$0xff]  ;;  %v1230_v12 = vmul.f32 %v2679_v25, %v2925_v38 }
 0x105   : > { %v3010_v19 = vld [vmem:[#allocation2 + $0xef] sm:$0xff]  ;;  %715 = vst.msk [vmem:[#allocation2 + $0x1b0] sm:$0xff] %vm331_vm2, %v683_v40  ;;  %2237 = vmatmul.msk.f32.gmra.mxu2 %vm412_vm1, %v1753_v51  ;;  %v846_v26 = vadd.f32 %v814_v59, %v777_v18  ;;  %v1299_v38 = vmul.f32 %v2689_v31, %v2985_v42  ;;  %v1231_v59 = vmul.f32 %v2679_v25, %v2955_v55  ;;  %v611_v18 = vpop.f32.mrf.mxu3 }
 0x106   : > { %704 = vst.msk [vmem:[#allocation2 + $0x108] sm:$0xff] %vm331_vm2, %v672_v27  ;;  %v1434_v41 = vadd.f32 %v2726_v60, %v1398_v5  ;;  %v1156_v2 = vadd.f32 %v1124_v4, %v1087_v0  ;;  %v3015_v32 = vld [vmem:[#allocation2 + $0xe9] sm:$0xff]  ;;  %v882_v23 = vmul.f32 %v2637_v54, %v3010_v19  ;;  %v3047_v52 = vld [vmem:[#allocation2 + $0xf1] sm:$0xff]  ;;  %v988_v5 = vmul.f32 %v2642_v57, %v2938_v36 }
 0x107   : > { %v575_v46 = vpop.f32.mrf.mxu0  ;;  %v1367_v39 = vmul.f32 %v2699_v35, %v3015_v32  ;;  %v3027_v33 = vld [vmem:[#allocation2 + $0xf0] sm:$0xff]  ;;  %v609_v0 = vadd.f32 %v2536_v20, %v608_v9  ;;  %v815_v36 = vmul.f32 %v2621_v45, %v3010_v19  ;;  %v1300_v55 = vmul.f32 %v2689_v31, %v3015_v32 }
 0x108   : > { %v576_v49 = vadd.f32 %v2536_v20, %v575_v46  ;;  %v1466_v3 = vmax.f32 %v1434_v41, 0.0  ;;  %v1261_v28 = vadd.f32 %v1229_v1, %v1156_v2  ;;  %v914_v13 = vadd.f32 %v882_v23, %v845_v15 }
 0x109   : > { %v1125_v56 = vmul.f32 %v2666_v17, %v3027_v33  ;;  %v1368_v2 = vmul.f32 %v2699_v35, %v3047_v52  ;;  %v1057_v23 = vmul.f32 %v2653_v62, %v2996_v48  ;;  %v652_v8 = vmax.f32 %v609_v0, 0.0 }
 0x10a   : > { %v641_v34 = vmax.f32 %v576_v49, 0.0  ;;  %v1498_v14 = vmin.f32 %v1466_v3, 6.0  ;;  %v1330_v10 = vadd.f32 %v1298_v6, %v1261_v28  ;;  %v1019_v37 = vadd.f32 %v987_v21, %v914_v13 }
 0x10b   : > { %v684_v49 = vmin.f32 %v652_v8, 6.0  ;;  %v778_v3 = vmul.f32 %v2616_v44, %v2951_v16  ;;  %v1232_v8 = vmul.f32 %v2679_v25, %v2985_v42 }
 0x10c   : > { %v673_v63 = vmin.f32 %v641_v34, 6.0  ;;  %2199 = vmatmul.msk.f32.gmra.mxu1 %vm331_vm2, %v1498_v14  ;;  %v1399_v43 = vadd.f32 %v1367_v39, %v1330_v10  ;;  %v1088_v58 = vadd.f32 %v1056_v47, %v1019_v37 }
 0x10d   : > { %v3042_v50 = vld [vmem:[#allocation2 + $0x107] sm:$0xff]  ;;  %716 = vst.msk [vmem:[#allocation2 + $0x1c8] sm:$0xff] %vm331_vm2, %v684_v49  ;;  %2238 = vmatmul.msk.f32.gmra.mxu2 %vm412_vm1, %v1754_v7  ;;  %v847_v37 = vadd.f32 %v815_v36, %v778_v3  ;;  %v614_v49 = vpop.f32.mrf.mxu3  ;;  %v3115_v3 = vpop.f32.mrf.mxu2 }
 0x10e   : > { %705 = vst.msk [vmem:[#allocation2 + $0x110] sm:$0xff] %vm331_vm2, %v673_v63  ;;  %v1435_v22 = vadd.f32 %v2726_v60, %v1399_v43  ;;  %v1157_v61 = vadd.f32 %v1125_v56, %v1088_v58  ;;  %v883_v53 = vmul.f32 %v2637_v54, %v3042_v50  ;;  %v3059_v15 = vld [vmem:[#allocation2 + $0x108] sm:$0xff]  ;;  %v989_v43 = vmul.f32 %v2642_v57, %v2968_v11 }
 0x10f   : > { %v578_v27 = vpop.f32.mrf.mxu0  ;;  %v1126_v47 = vmul.f32 %v2666_v17, %v3059_v15  ;;  %v612_v58 = vadd.f32 %v2536_v20, %v611_v18  ;;  %v816_v11 = vmul.f32 %v2621_v45, %v3042_v50 }
 0x110   : > { %v579_v4 = vadd.f32 %v2536_v20, %v578_v27  ;;  %v1467_v29 = vmax.f32 %v1435_v22, 0.0  ;;  %v1262_v1 = vadd.f32 %v1230_v12, %v1157_v61  ;;  %v915_v41 = vadd.f32 %v883_v53, %v846_v26 }
 0x111   : > { %v1058_v53 = vmul.f32 %v2653_v62, %v3027_v33  ;;  %v653_v9 = vmax.f32 %v612_v58, 0.0 }
 0x112   : > { %v642_v46 = vmax.f32 %v579_v4, 0.0  ;;  %v1499_v6 = vmin.f32 %v1467_v29, 6.0  ;;  %v1331_v21 = vadd.f32 %v1299_v38, %v1262_v1  ;;  %v1020_v24 = vadd.f32 %v988_v5, %v915_v41 }
 0x113   : > { %v685_v0 = vmin.f32 %v653_v9, 6.0  ;;  %v779_v4 = vmul.f32 %v2616_v44, %v2981_v30 }
 0x114   : > { %v674_v28 = vmin.f32 %v642_v46, 6.0  ;;  %2200 = vmatmul.msk.f32.gmra.mxu1 %vm331_vm2, %v1499_v6  ;;  %v1400_v13 = vadd.f32 %v1368_v2, %v1331_v21  ;;  %v1089_v39 = vadd.f32 %v1057_v23, %v1020_v24  ;;  %v1755_v23 = vld [vmem:[%s2414_s14 + $0x80] sm:$0xff] }
 0x115   : > { %v3074_v34 = vld [vmem:[#allocation2 + $0x10f] sm:$0xff]  ;;  %717 = vst.msk [vmem:[#allocation2 + $0x1d0] sm:$0xff] %vm331_vm2, %v685_v0  ;;  %2239 = vmatmul.msk.f32.gmra.mxu2 %vm412_vm1, %v1755_v23  ;;  %v848_v21 = vadd.f32 %v816_v11, %v779_v4  ;;  %v617_v0 = vpop.f32.mrf.mxu3 }
 0x116   : > { %706 = vst.msk [vmem:[#allocation2 + $0x128] sm:$0xff] %vm331_vm2, %v674_v28  ;;  %v1436_v16 = vadd.f32 %v2726_v60, %v1400_v13  ;;  %v1158_v14 = vadd.f32 %v1126_v47, %v1089_v39  ;;  %v3079_v10 = vld [vmem:[#allocation2 + $0x109] sm:$0xff]  ;;  %v884_v40 = vmul.f32 %v2637_v54, %v3074_v34  ;;  %v3111_v6 = vld [vmem:[#allocation2 + $0x111] sm:$0xff]  ;;  %v1301_v28 = vmul.f32 %v2689_v31, %v3047_v52  ;;  %v3124_v39 = vld [vmem:[%s3861_s1] ss:$0 sm:$0xff] }
 0x117   : > { %v581_v63 = vpop.f32.mrf.mxu0  ;;  %v1369_v61 = vmul.f32 %v2699_v35, %v3079_v10  ;;  %v3091_v26 = vld [vmem:[#allocation2 + $0x110] sm:$0xff]  ;;  %v990_v13 = vmul.f32 %v2642_v57, %v2996_v48  ;;  %v615_v47 = vadd.f32 %v3124_v39, %v614_v49  ;;  %v1059_v48 = vmul.f32 %v2653_v62, %v3059_v15 }
 0x118   : > { %v582_v56 = vadd.f32 %v2536_v20, %v581_v63  ;;  %v1468_v51 = vmax.f32 %v1436_v16, 0.0  ;;  %v1263_v12 = vadd.f32 %v1231_v59, %v1158_v14  ;;  %v916_v22 = vadd.f32 %v884_v40, %v847_v37 }
 0x119   : > { %v1127_v2 = vmul.f32 %v2666_v17, %v3091_v26  ;;  %v1370_v37 = vmul.f32 %v2699_v35, %v3111_v6  ;;  %v654_v18 = vmax.f32 %v615_v47, 0.0  ;;  %v817_v63 = vmul.f32 %v2621_v45, %v3074_v34 }
 0x11a   : > { %v643_v27 = vmax.f32 %v582_v56, 0.0  ;;  %v1500_v38 = vmin.f32 %v1468_v51, 6.0  ;;  %v1332_v5 = vadd.f32 %v1300_v55, %v1263_v12  ;;  %v1021_v20 = vadd.f32 %v989_v43, %v916_v22 }
 0x11b   : > { %v686_v51 = vmin.f32 %v654_v18, 6.0  ;;  %v780_v12 = vmul.f32 %v2616_v44, %v3010_v19  ;;  %v1233_v45 = vmul.f32 %v2679_v25, %v3015_v32  ;;  %v1302_v32 = vmul.f32 %v2689_v31, %v3079_v10 }
 0x11c   : > { %v675_v29 = vmin.f32 %v643_v27, 6.0  ;;  %2201 = vmatmul.msk.f32.gmra.mxu1 %vm331_vm2, %v1500_v38  ;;  %v1401_v1 = vadd.f32 %v1369_v61, %v1332_v5  ;;  %v1090_v41 = vadd.f32 %v1058_v53, %v1021_v20  ;;  %v1756_v20 = vld [vmem:[%s2414_s14 + $0x88] sm:$0xff] }
 0x11d   : > { %v3106_v36 = vld [vmem:[#allocation2 + $0x127] sm:$0xff]  ;;  %718 = vst.msk [vmem:[#allocation2 + $0x1e8] sm:$0xff] %vm331_vm2, %v686_v51  ;;  %v849_v38 = vadd.f32 %v817_v63, %v780_v12  ;;  %2240 = vmatmul.msk.f32.gmra.mxu2 %vm412_vm1, %v1756_v20  ;;  %v1303_v12 = vmul.f32 %v2689_v31, %v3111_v6 }
 0x11e   : > { %707 = vst.msk [vmem:[#allocation2 + $0x130] sm:$0xff] %vm331_vm2, %v675_v29  ;;  %v1437_v30 = vadd.f32 %v2726_v60, %v1401_v1  ;;  %v1159_v46 = vadd.f32 %v1127_v2, %v1090_v41  ;;  %v885_v24 = vmul.f32 %v2637_v54, %v3106_v36  ;;  %v3130_v40 = vld [vmem:[#allocation2 + $0x128] sm:$0xff]  ;;  %v991_v29 = vmul.f32 %v2642_v57, %v3027_v33  ;;  %v3159_v41 = vpop.f32.mrf.mxu2  ;;  %v3171_v33 = vld [vmem:[%s3863_s3 + $0x3] ss:$0 sm:$0xff] }
 0x11f   : > { %v584_v42 = vpop.f32.mrf.mxu0  ;;  %v1128_v9 = vmul.f32 %v2666_v17, %v3130_v40  ;;  %v618_v1 = vadd.f32 %v3124_v39, %v617_v0 }
 0x120   : > { %v585_v7 = vadd.f32 %v3124_v39, %v584_v42  ;;  %v1469_v59 = vmax.f32 %v1437_v30, 0.0  ;;  %v1264_v16 = vadd.f32 %v1232_v8, %v1159_v46  ;;  %v917_v14 = vadd.f32 %v885_v24, %v848_v21 }
 0x121   : > { %v1060_v21 = vmul.f32 %v2653_v62, %v3091_v26  ;;  %v655_v57 = vmax.f32 %v618_v1, 0.0  ;;  %v818_v24 = vmul.f32 %v3171_v33, %v3106_v36 }
 0x122   : > { %v644_v55 = vmax.f32 %v585_v7, 0.0  ;;  %v1501_v43 = vmin.f32 %v1469_v59, 6.0  ;;  %v1333_v58 = vadd.f32 %v1301_v28, %v1264_v16  ;;  %v1022_v56 = vadd.f32 %v990_v13, %v917_v14  ;;  %v3178_v7 = vld [vmem:[%s3863_s3] ss:$0 sm:$0xff] }
 0x123   : > { %v687_v47 = vmin.f32 %v655_v57, 6.0  ;;  %v781_v62 = vmul.f32 %v3178_v7, %v3042_v50 }
 0x124   : > { %v676_v22 = vmin.f32 %v644_v55, 6.0  ;;  %2202 = vmatmul.msk.f32.gmra.mxu1 %vm331_vm2, %v1501_v43  ;;  %v1402_v61 = vadd.f32 %v1370_v37, %v1333_v58  ;;  %v1091_v53 = vadd.f32 %v1059_v48, %v1022_v56  ;;  %v1234_v48 = vmul.f32 %v2679_v25, %v3047_v52  ;;  %v3197_v58 = vld [vmem:[%s3863_s3 + $0x6] ss:$0 sm:$0xff]  ;;  %v1757_v52 = vld [vmem:[%s2414_s14 + $0x90] sm:$0xff]  ;;  %v620_v56 = vpop.f32.mrf.mxu3 }
 0x125   : > { %v3144_v11 = vld [vmem:[#allocation2 + $0x12f] sm:$0xff]  ;;  %719 = vst.msk [vmem:[#allocation2 + $0x1f0] sm:$0xff] %vm331_vm2, %v687_v47  ;;  %v850_v43 = vadd.f32 %v818_v24, %v781_v62  ;;  %2241 = vmatmul.msk.f32.gmra.mxu2 %vm412_vm1, %v1757_v52  ;;  %v3255_v24 = vld [vmem:[%s3863_s3 + $0x5] ss:$0 sm:$0xff] }
 0x126   : > { %708 = vst.msk [vmem:[#allocation2 + $0x148] sm:$0xff] %vm331_vm2, %v676_v22  ;;  %v1438_v27 = vadd.f32 %v2726_v60, %v1402_v61  ;;  %v1160_v44 = vadd.f32 %v1128_v9, %v1091_v53  ;;  %v3148_v19 = vld [vmem:[#allocation2 + $0x129] sm:$0xff]  ;;  %v886_v5 = vmul.f32 %v2637_v54, %v3144_v11  ;;  %v3192_v55 = vld [vmem:[#allocation2 + $0x131] sm:$0xff]  ;;  %v3207_v22 = vld [vmem:[%s3863_s3 + $0x1] ss:$0 sm:$0xff]  ;;  %v1235_v53 = vmul.f32 %v2679_v25, %v3079_v10 }
 0x127   : > { %v587_v4 = vpop.f32.mrf.mxu0  ;;  %v1371_v30 = vmul.f32 %v2699_v35, %v3148_v19  ;;  %v3164_v46 = vld [vmem:[#allocation2 + $0x130] sm:$0xff]  ;;  %v992_v61 = vmul.f32 %v3207_v22, %v3059_v15  ;;  %v621_v9 = vadd.f32 %v3124_v39, %v620_v56  ;;  %v3225_v25 = vld [vmem:[%s3863_s3 + $0x4] ss:$0 sm:$0xff]  ;;  %v819_v0 = vmul.f32 %v3171_v33, %v3144_v11 }
 0x128   : > { %v588_v2 = vadd.f32 %v3124_v39, %v587_v4  ;;  %v1470_v23 = vmax.f32 %v1438_v27, 0.0  ;;  %v1265_v8 = vadd.f32 %v1233_v45, %v1160_v44  ;;  %v918_v54 = vadd.f32 %v886_v5, %v849_v38  ;;  %v3215_v45 = vpop.f32.mrf.mxu2  ;;  %3883 = vst [vmem:[#allocation3_spill] sm:$0xff] %v3225_v25 }
 0x129   : > { %v1129_v37 = vmul.f32 %v2666_v17, %v3164_v46  ;;  %v1372_v5 = vmul.f32 %v2699_v35, %v3192_v55  ;;  %v1061_v15 = vmul.f32 %v3225_v25, %v3130_v40  ;;  %v656_v10 = vmax.f32 %v621_v9, 0.0 }
 0x12a   : > { %v645_v49 = vmax.f32 %v588_v2, 0.0  ;;  %v1502_v42 = vmin.f32 %v1470_v23, 6.0  ;;  %v1334_v28 = vadd.f32 %v1302_v32, %v1265_v8  ;;  %v1023_v13 = vadd.f32 %v991_v29, %v918_v54  ;;  %v3238_v8 = vld [vmem:[%s3863_s3 + $0x2] ss:$0 sm:$0xff] }
 0x12b   : > { %v688_v2 = vmin.f32 %v656_v10, 6.0  ;;  %v782_v35 = vmul.f32 %v3178_v7, %v3074_v34  ;;  %v993_v23 = vmul.f32 %v3207_v22, %v3091_v26  ;;  %v3242_v54 = vmul.f32 %v3238_v8, %v3111_v6  ;;  %v3248_v34 = vld [vmem:[%s3863_s3 + $0x7] ss:$0 sm:$0xff] }
 0x12c   : > { %v677_v59 = vmin.f32 %v645_v49, 6.0  ;;  %2203 = vmatmul.msk.f32.gmra.mxu1 %vm331_vm2, %v1502_v42  ;;  %v1403_v16 = vadd.f32 %v1371_v30, %v1334_v28  ;;  %v1092_v14 = vadd.f32 %v1060_v21, %v1023_v13  ;;  %v1304_v6 = vmul.f32 %v3255_v24, %v3148_v19 }
 0x12d   : > { %v3188_v18 = vld [vmem:[#allocation2 + $0x147] sm:$0xff]  ;;  %720 = vst.msk [vmem:[#allocation2 + $0x208] sm:$0xff] %vm331_vm2, %v688_v2  ;;  %v1062_v42 = vmul.f32 %v3225_v25, %v3164_v46  ;;  %v783_v28 = vmul.f32 %v3178_v7, %v3106_v36  ;;  %v3268_v13 = vmul.f32 %v3207_v22, %v3130_v40  ;;  %v3277_v36 = vmul.f32 %v3255_v24, %v3192_v55 }
 0x12e   : > { %709 = vst.msk [vmem:[#allocation2 + $0x150] sm:$0xff] %vm331_vm2, %v677_v59  ;;  %v1439_v50 = vadd.f32 %v2726_v60, %v1403_v16  ;;  %v1161_v63 = vadd.f32 %v1129_v37, %v1092_v14  ;;  %v887_v17 = vmul.f32 %v3197_v58, %v3188_v18  ;;  %v3220_v20 = vld [vmem:[#allocation2 + $0x148] sm:$0xff]  ;;  %v851_v16 = vadd.f32 %v819_v0, %v782_v35  ;;  %v1758_v37 = vld [vmem:[%s2414_s14 + $0x98] sm:$0xff]  ;;  %v1759_v2 = vld [vmem:[%s2414_s14 + $0xa0] sm:$0xff] }
 0x12f   : > { %v590_v51 = vpop.f32.mrf.mxu0  ;;  %v1130_v26 = vmul.f32 %v3248_v34, %v3220_v20  ;;  %2242 = vmatmul.msk.f32.gmra.mxu2 %vm412_vm1, %v1758_v37  ;;  %v1063_v10 = vmul.f32 %v3225_v25, %v3220_v20 }
 0x130   : > { %v591_v27 = vadd.f32 %v3124_v39, %v590_v51  ;;  %v1471_v31 = vmax.f32 %v1439_v50, 0.0  ;;  %v1266_v44 = vadd.f32 %v1234_v48, %v1161_v63  ;;  %v919_v38 = vadd.f32 %v887_v17, %v850_v43  ;;  %v623_v48 = vpop.f32.mrf.mxu3  ;;  %v3281_v63 = vpop.f32.mrf.mxu2 }
 0x131   : > { %v624_v40 = vadd.f32 %v3124_v39, %v623_v48  ;;  %v784_v43 = vmul.f32 %v3178_v7, %v3144_v11  ;;  %v3300_v11 = vmul.f32 %v3207_v22, %v3164_v46 }
 0x132   : > { %v646_v4 = vmax.f32 %v591_v27, 0.0  ;;  %v1503_v32 = vmin.f32 %v1471_v31, 6.0  ;;  %v1335_v29 = vadd.f32 %v1303_v12, %v1266_v44  ;;  %v1024_v1 = vadd.f32 %v992_v61, %v919_v38  ;;  %v3293_v12 = vld [vmem:[%s3863_s3 + $0x8] ss:$0 sm:$0xff] }
 0x133   : > { %v657_v27 = vmax.f32 %v624_v40, 0.0 }
 0x134   : > { %v678_v30 = vmin.f32 %v646_v4, 6.0  ;;  %2204 = vmatmul.msk.f32.gmra.mxu1 %vm331_vm2, %v1503_v32  ;;  %v1404_v21 = vadd.f32 %v1372_v5, %v1335_v29  ;;  %v1093_v57 = vadd.f32 %v1061_v15, %v1024_v1  ;;  %v3308_v4 = vmul.f32 %v3238_v8, %v3192_v55 }
 0x135   : > { %v3260_v49 = vld [vmem:[#allocation2 + $0x14f] sm:$0xff]  ;;  %v689_v15 = vmin.f32 %v657_v27, 6.0  ;;  %v3319_v55 = vmul.f32 %v3207_v22, %v3220_v20 }
 0x136   : > { %710 = vst.msk [vmem:[#allocation2 + $0x168] sm:$0xff] %vm331_vm2, %v678_v30  ;;  %v1440_v47 = vadd.f32 %v2726_v60, %v1404_v21  ;;  %v1162_v62 = vadd.f32 %v1130_v26, %v1093_v57  ;;  %v1198_v59 = vld [vmem:[#allocation2 + $0x149] sm:$0xff]  ;;  %v888_v14 = vmul.f32 %v3197_v58, %v3260_v49  ;;  %v3285_v60 = vmul.f32 %v3238_v8, %v3148_v19  ;;  %v1199_v5 = vld [vmem:[#allocation2 + $0x151] sm:$0xff]  ;;  %v3325_v57 = vld [vmem:[%s3866_s6] ss:$0 sm:$0xff] }
 0x137   : > { %v593_v50 = vpop.f32.mrf.mxu0  ;;  %v1373_v61 = vmul.f32 %v3293_v12, %v1198_v59  ;;  %v956_v9 = vld [vmem:[#allocation2 + $0x150] sm:$0xff]  ;;  %v820_v19 = vmul.f32 %v3171_v33, %v3188_v18  ;;  %v821_v0 = vmul.f32 %v3171_v33, %v3260_v49  ;;  %v1374_v35 = vmul.f32 %v3293_v12, %v1199_v5  ;;  %721 = vst.msk [vmem:[#allocation2 + $0x210] sm:$0xff] %vm331_vm2, %v689_v15  ;;  %v3330_v26 = vld [vmem:[%s3864_s4] ss:$0 sm:$0xff] }
 0x138   : > { %v594_v17 = vadd.f32 %v3124_v39, %v593_v50  ;;  %v1472_v52 = vmax.f32 %v1440_v47, 0.0  ;;  %v1267_v56 = vadd.f32 %v1235_v53, %v1162_v62  ;;  %v920_v51 = vadd.f32 %v888_v14, %v851_v16  ;;  %2243 = vmatmul.msk.f32.gmra.mxu2 %vm412_vm1, %v1759_v2  ;;  %v3338_v47 = vpop.f32.mrf.mxu2 }
 0x139   : > { %v1131_v1 = vmul.f32 %v3248_v34, %v956_v9  ;;  %v852_v30 = vadd.f32 %v820_v19, %v783_v28  ;;  %v785_v21 = vmul.f32 %v3178_v7, %v3188_v18  ;;  %v3335_v20 = vmul.f32 %v3255_v24, %v1198_v59 }
 0x13a   : > { %v647_v31 = vmax.f32 %v594_v17, 0.0  ;;  %v1504_v53 = vmin.f32 %v1472_v52, 6.0  ;;  %v1336_v44 = vadd.f32 %v1304_v6, %v1267_v56  ;;  %v1025_v38 = vadd.f32 %v993_v23, %v920_v51 }
 0x13b   : > { %v853_v62 = vadd.f32 %v821_v0, %v784_v43  ;;  %v3341_v16 = vmul.f32 %v3225_v25, %v956_v9  ;;  %v3344_v14 = vmul.f32 %v3255_v24, %v1199_v5  ;;  %v3347_v37 = vmul.f32 %v3238_v8, %v1198_v59  ;;  %v1760_v0 = vld [vmem:[%s2414_s14 + $0xa8] sm:$0xff] }
 0x13c   : > { %v679_v32 = vmin.f32 %v647_v31, 6.0  ;;  %2205 = vmatmul.msk.f32.gmra.mxu1 %vm331_vm2, %v1504_v53  ;;  %v1405_v46 = vadd.f32 %v1373_v61, %v1336_v44  ;;  %v1094_v29 = vadd.f32 %v1062_v42, %v1025_v38  ;;  %v3354_v51 = vmul.f32 %v3178_v7, %v3260_v49  ;;  %v962_v53 = vld [vmem:[#allocation2 + $0x1b0] sm:$0xff] }
 0x13d   : > { %v747_v23 = vld [vmem:[#allocation2 + $0x167] sm:$0xff]  ;;  %v3357_v61 = vmul.f32 %v3207_v22, %v956_v9  ;;  %v3360_v59 = vmul.f32 %v3238_v8, %v1199_v5  ;;  %v3364_v44 = vld [vmem:[#allocation2 + $0x1b1] sm:$0xff] }
 0x13e   : > { %711 = vst.msk [vmem:[#allocation2 + $0x170] sm:$0xff] %vm331_vm2, %v679_v32  ;;  %v1441_v6 = vadd.f32 %v3330_v26, %v1405_v46  ;;  %v1163_v42 = vadd.f32 %v1131_v1, %v1094_v29  ;;  %v889_v18 = vmul.f32 %v3197_v58, %v747_v23  ;;  %v957_v52 = vld [vmem:[#allocation2 + $0x168] sm:$0xff]  ;;  %v822_v43 = vmul.f32 %v3171_v33, %v747_v23 }
 0x13f   : > { %v596_v28 = vpop.f32.mrf.mxu0  ;;  %3884 = vst [vmem:[#allocation4_spill] sm:$0xff] %v3364_v44  ;;  %v1132_v49 = vmul.f32 %v3248_v34, %v957_v52  ;;  %v3369_v9 = vmul.f32 %v3225_v25, %v957_v52  ;;  %v3372_v5 = vmul.f32 %v3178_v7, %v747_v23  ;;  %v3385_v32 = vmul.f32 %v3207_v22, %v957_v52  ;;  %v753_v46 = vld [vmem:[#allocation2 + $0x1c7] sm:$0xff] }
 0x140   : > { %v597_v48 = vadd.f32 %v3124_v39, %v596_v28  ;;  %v1473_v50 = vmax.f32 %v1441_v6, 0.0  ;;  %v1268_v40 = vadd.f32 %v3242_v54, %v1163_v42  ;;  %v921_v17 = vadd.f32 %v889_v18, %v852_v30  ;;  %v3409_v6 = vld [vmem:[#allocation2 + $0x1e7] sm:$0xff]  ;;  %2244 = vmatmul.msk.f32.gmra.mxu2 %vm412_vm1, %v1760_v0 }
 0x141   : > { %v1641_v56 = vpop.f32.mrf.mxu1  ;;  %v3389_v2 = vadd.f32 %v822_v43, %v785_v21  ;;  %v3392_v23 = vmul.f32 %v3248_v34, %v962_v53  ;;  %v3407_v21 = vmul.f32 %v3255_v24, %v3364_v44  ;;  %3887 = vst [vmem:[#allocation7_spill] sm:$0xff] %v3409_v6  ;;  %v3411_v42 = vld [vmem:[#allocation2 + $0x207] sm:$0xff] }
 0x142   : > { %v648_v27 = vmax.f32 %v597_v48, 0.0  ;;  %v1642_v54 = vadd.f32 %v3325_v57, %v1641_v56  ;;  %v1505_v19 = vmin.f32 %v1473_v50, 6.0  ;;  %v1337_v31 = vadd.f32 %v3277_v36, %v1268_v40  ;;  %3888 = vst [vmem:[#allocation8_spill] sm:$0xff] %v3411_v42  ;;  %v3416_v48 = vpop.f32.mrf.mxu2 }
 0x143   : > { %v1026_v38 = vadd.f32 %v3268_v13, %v921_v17  ;;  %3886 = vst [vmem:[#allocation6_spill] sm:$0xff] %v3407_v21  ;;  %v3419_v50 = vmul.f32 %v3207_v22, %v962_v53  ;;  %v3422_v40 = vmul.f32 %v3178_v7, %v753_v46 }
 0x144   : > { %v680_v15 = vmin.f32 %v648_v27, 6.0  ;;  %v1984_v36 = vadd.f32 %v3115_v3, %v1642_v54  ;;  %2206 = vmatmul.msk.f32.gmra.mxu1 %vm331_vm2, %v1505_v19  ;;  %v1406_v13 = vadd.f32 %v1374_v35, %v1337_v31  ;;  %v3396_v3 = vmul.f32 %v3293_v12, %v3364_v44  ;;  %3889 = vst [vmem:[#allocation9_spill] sm:$0xff] %v3416_v48 }
 0x145   : > { %v1095_v29 = vadd.f32 %v1063_v10, %v1026_v38  ;;  %v3387_v1 = vld [vmem:[#allocation2 + $0x16f] sm:$0xff]  ;;  %v3403_v10 = vmul.f32 %v3225_v25, %v962_v53  ;;  %3890 = vst [vmem:[#allocation10_spill] sm:$0xff] %v3419_v50  ;;  %v3426_v19 = vmul.f32 %v3171_v33, %v753_v46 }
 0x146   : > { %3885 = vst [vmem:[#allocation5_spill] sm:$0xff] %v3396_v3  ;;  %v1442_v35 = vadd.f32 %v3330_v26, %v1406_v13  ;;  %v890_v30 = vmul.f32 %v3197_v58, %v3387_v1  ;;  %v1200_v56 = vld [vmem:[#allocation2 + $0x169] sm:$0xff]  ;;  %v1201_v54 = vld [vmem:[#allocation2 + $0x171] sm:$0xff]  ;;  %v823_v53 = vmul.f32 %v3171_v33, %v3387_v1 }
 0x147   : > { %712 = vst.msk [vmem:[#allocation2 + $0x188] sm:$0xff] %vm331_vm2, %v680_v15  ;;  %v599_v18 = vpop.f32.mrf.mxu0  ;;  %v1164_v28 = vadd.f32 %v1132_v49, %v1095_v29  ;;  %v958_v27 = vld [vmem:[#allocation2 + $0x170] sm:$0xff]  ;;  %v3433_v49 = vmul.f32 %v3171_v33, %v3409_v6  ;;  %v3437_v15 = vmul.f32 %v3197_v58, %v3411_v42  ;;  %v1375_v29 = vmul.f32 %v3293_v12, %v1200_v56 }
 0x148   : > { %2017 = vst.msk [vmem:[%s3379_s23] sm:$0xff] %vm2016_vm4, %v1984_v36  ;;  %v600_v17 = vadd.f32 %v3124_v39, %v599_v18  ;;  %v1474_v52 = vmax.f32 %v1442_v35, 0.0  ;;  %v922_v43 = vadd.f32 %v890_v30, %v853_v62  ;;  %v1133_v35 = vmul.f32 %v3248_v34, %v958_v27  ;;  %v3510_v3 = vld [vmem:[#allocation2 + $0x1cf] sm:$0xff] }
 0x149   : > { %v1644_v31 = vpop.f32.mrf.mxu1  ;;  %v1269_v38 = vadd.f32 %v3285_v60, %v1164_v28  ;;  %v1376_v30 = vmul.f32 %v3293_v12, %v1201_v54  ;;  %3895 = vst [vmem:[#allocation15_spill] sm:$0xff] %v3510_v3 }
 0x14a   : > { %v649_v62 = vmax.f32 %v600_v17, 0.0  ;;  %v1645_v36 = vadd.f32 %v3325_v57, %v1644_v31  ;;  %v1506_v13 = vmin.f32 %v1474_v52, 6.0  ;;  %v1027_v0 = vadd.f32 %v3300_v11, %v922_v43  ;;  %v1761_v11 = vld [vmem:[%s2414_s14 + $0xb0] sm:$0xff] }
 0x14b   : > { %v1338_v60 = vadd.f32 %v3335_v20, %v1269_v38  ;;  %v3449_v52 = vmul.f32 %v3255_v24, %v1200_v56  ;;  %v3452_v43 = vld [vmem:[#allocation2 + $0x1c9] sm:$0xff]  ;;  %v3455_v38 = vmul.f32 %v3225_v25, %v958_v27  ;;  %2245 = vmatmul.msk.f32.gmra.mxu2 %vm412_vm1, %v1761_v11 }
 0x14c   : > { %v681_v18 = vmin.f32 %v649_v62, 6.0  ;;  %v1985_v28 = vadd.f32 %v3159_v41, %v1645_v36  ;;  %2207 = vmatmul.msk.f32.gmra.mxu1 %vm331_vm2, %v1506_v13  ;;  %v1096_v17 = vadd.f32 %v3341_v16, %v1027_v0  ;;  %3891 = vst [vmem:[#allocation11_spill] sm:$0xff] %v3452_v43  ;;  %v3458_v62 = vmul.f32 %v3255_v24, %v1201_v54 }
 0x14d   : > { %v1407_v20 = vadd.f32 %v1375_v29, %v1338_v60  ;;  %v3461_v41 = vmul.f32 %v3238_v8, %v1200_v56  ;;  %v855_v13 = vadd.f32 %v823_v53, %v3354_v51  ;;  %v3467_v0 = vmul.f32 %v3197_v58, %v753_v46  ;;  %v3469_v60 = vld [vmem:[#allocation2 + $0x1c8] sm:$0xff]  ;;  %v3475_v56 = vpop.f32.mrf.mxu2 }
 0x14e   : > { %v749_v31 = vld [vmem:[#allocation2 + $0x187] sm:$0xff]  ;;  %713 = vst.msk [vmem:[#allocation2 + $0x190] sm:$0xff] %vm331_vm2, %v681_v18  ;;  %v1165_v16 = vadd.f32 %v1133_v35, %v1096_v17  ;;  %v3479_v35 = vmul.f32 %v3248_v34, %v3469_v60  ;;  %v3483_v51 = vmul.f32 %v3293_v12, %v3452_v43  ;;  %v788_v17 = vmul.f32 %v3178_v7, %v3387_v1 }
 0x14f   : > { %v891_v36 = vmul.f32 %v3197_v58, %v749_v31  ;;  %3892 = vst [vmem:[#allocation12_spill] sm:$0xff] %v3469_v60  ;;  %v602_v29 = vpop.f32.mrf.mxu0  ;;  %v1443_v42 = vadd.f32 %v3330_v26, %v1407_v20  ;;  %v824_v44 = vmul.f32 %v3171_v33, %v749_v31  ;;  %v3495_v43 = vmul.f32 %v3238_v8, %v1201_v54 }
 0x150   : > { %2018 = vst.msk [vmem:[%s3379_s23 + $0x8] sm:$0xff] %vm2016_vm4, %v1985_v28  ;;  %v603_v46 = vadd.f32 %v3124_v39, %v602_v29  ;;  %v1270_v53 = vadd.f32 %v3308_v4, %v1165_v16  ;;  %v959_v28 = vld [vmem:[#allocation2 + $0x188] sm:$0xff]  ;;  %v3501_v1 = vmul.f32 %v3178_v7, %v749_v31 }
 0x151   : > { %3893 = vst [vmem:[#allocation13_spill] sm:$0xff] %v3475_v56  ;;  %v923_v18 = vadd.f32 %v891_v36, %v3389_v2  ;;  %v1647_v11 = vpop.f32.mrf.mxu1  ;;  %v1475_v20 = vmax.f32 %v1443_v42, 0.0  ;;  %v3492_v56 = vmul.f32 %v3207_v22, %v958_v27  ;;  %v3504_v42 = vmul.f32 %v3207_v22, %v959_v28 }
 0x152   : > { %3894 = vst [vmem:[#allocation14_spill] sm:$0xff] %v3483_v51  ;;  %v650_v39 = vmax.f32 %v603_v46, 0.0  ;;  %v1648_v4 = vadd.f32 %v3325_v57, %v1647_v11  ;;  %v1339_v2 = vadd.f32 %v3344_v14, %v1270_v53  ;;  %v1134_v27 = vmul.f32 %v3248_v34, %v959_v28  ;;  %v1762_v11 = vld [vmem:[%s2414_s14 + $0xb8] sm:$0xff]  ;;  %v3512_v14 = vld [vmem:[#allocation2 + $0x1d0] sm:$0xff] }
 0x153   : > { %v1028_v16 = vadd.f32 %v3319_v55, %v923_v18  ;;  %v1507_v36 = vmin.f32 %v1475_v20, 6.0  ;;  %3896 = vst [vmem:[#allocation16_spill] sm:$0xff] %v3512_v14  ;;  %v856_v53 = vadd.f32 %v824_v44, %v3372_v5  ;;  %v3517_v18 = vmul.f32 %v3225_v25, %v959_v28  ;;  %v3533_v5 = vld [vmem:[#allocation2 + $0x1e8] sm:$0xff]  ;;  %2246 = vmatmul.msk.f32.gmra.mxu2 %vm412_vm1, %v1762_v11 }
 0x154   : > { %v682_v29 = vmin.f32 %v650_v39, 6.0  ;;  %v1986_v54 = vadd.f32 %v3215_v45, %v1648_v4  ;;  %v1408_v21 = vadd.f32 %v1376_v30, %v1339_v2  ;;  %v3521_v45 = vmul.f32 %v3197_v58, %v3510_v3  ;;  %3898 = vst [vmem:[#allocation18_spill] sm:$0xff] %v3533_v5 }
 0x155   : > { %v1097_v46 = vadd.f32 %v3369_v9, %v1028_v16  ;;  %2208 = vmatmul.msk.f32.gmra.mxu1 %vm331_vm2, %v1507_v36  ;;  %v1202_v55 = vld [vmem:[#allocation2 + $0x189] sm:$0xff]  ;;  %v3525_v9 = vmul.f32 %v3248_v34, %v3512_v14  ;;  %v1203_v4 = vld [vmem:[#allocation2 + $0x191] sm:$0xff]  ;;  %v3531_v44 = vmul.f32 %v3197_v58, %v3409_v6  ;;  %v3537_v28 = vmul.f32 %v3225_v25, %v3469_v60 }
 0x156   : > { %v750_v31 = vld [vmem:[#allocation2 + $0x18f] sm:$0xff]  ;;  %714 = vst.msk [vmem:[#allocation2 + $0x1a8] sm:$0xff] %vm331_vm2, %v682_v29  ;;  %v1444_v30 = vadd.f32 %v3330_v26, %v1408_v21  ;;  %v3543_v21 = vpop.f32.mrf.mxu2  ;;  %v3547_v16 = vmul.f32 %v3248_v34, %v3533_v5  ;;  %v3551_v36 = vmul.f32 %v3171_v33, %v3510_v3  ;;  %v3554_v29 = vmul.f32 %v3238_v8, %v1202_v55 }
 0x157   : > { %3897 = vst [vmem:[#allocation17_spill] sm:$0xff] %v3525_v9  ;;  %v1166_v20 = vadd.f32 %v1134_v27, %v1097_v46  ;;  %v960_v39 = vld [vmem:[#allocation2 + $0x190] sm:$0xff]  ;;  %v892_v2 = vmul.f32 %v3197_v58, %v750_v31  ;;  %v825_v46 = vmul.f32 %v3171_v33, %v750_v31  ;;  %v1378_v51 = vmul.f32 %v3293_v12, %v1203_v4 }
 0x158   : > { %2019 = vst.msk [vmem:[%s3379_s23 + $0x10] sm:$0xff] %vm2016_vm4, %v1986_v54  ;;  %v1476_v27 = vmax.f32 %v1444_v30, 0.0  ;;  %v1135_v5 = vmul.f32 %v3248_v34, %v960_v39  ;;  %v3564_v50 = vmul.f32 %v3255_v24, %v1202_v55  ;;  %v3569_v48 = vmul.f32 %v3255_v24, %v1203_v4 }
 0x159   : > { %3899 = vst [vmem:[#allocation19_spill] sm:$0xff] %v3543_v21  ;;  %v1271_v54 = vadd.f32 %v3347_v37, %v1166_v20  ;;  %v1650_v11 = vpop.f32.mrf.mxu1  ;;  %v1377_v21 = vmul.f32 %v3293_v12, %v1202_v55  ;;  %v924_v6 = vadd.f32 %v892_v2, %v855_v13  ;;  %v1068_v20 = vmul.f32 %v3225_v25, %v960_v39 }
 0x15a   : > { %3900 = vst [vmem:[#allocation20_spill] sm:$0xff] %v3547_v16  ;;  %v1651_v3 = vadd.f32 %v3325_v57, %v1650_v11  ;;  %v1508_v60 = vmin.f32 %v1476_v27, 6.0  ;;  %v790_v13 = vmul.f32 %v3178_v7, %v750_v31  ;;  %v1763_v11 = vld [vmem:[%s2414_s14 + $0xc0] sm:$0xff]  ;;  %v857_v27 = vadd.f32 %v825_v46, %v788_v17 }
 0x15b   : > { %v1340_v30 = vadd.f32 %v3449_v52, %v1271_v54  ;;  %v1029_v37 = vadd.f32 %v3357_v61, %v924_v6  ;;  %3901 = vst [vmem:[#allocation21_spill] sm:$0xff] %v3569_v48  ;;  %v1001_v52 = vmul.f32 %v3207_v22, %v960_v39  ;;  %v3575_v54 = vld [vmem:[#allocation2 + $0x1ef] sm:$0xff]  ;;  %v3580_v48 = vmul.f32 %v3238_v8, %v1203_v4 }
 0x15c   : > { %v1987_v2 = vadd.f32 %v3281_v63, %v1651_v3  ;;  %3902 = vst [vmem:[#allocation22_spill] sm:$0xff] %v3575_v54  ;;  %v898_v63 = vmul.f32 %v3197_v58, %v3575_v54  ;;  %v3586_v3 = vmul.f32 %v3225_v25, %v3512_v14  ;;  %v862_v39 = vadd.f32 %v3433_v49, %v3422_v40 }
 0x15d   : > { %v1409_v16 = vadd.f32 %v1377_v21, %v1340_v30  ;;  %2209 = vmatmul.msk.f32.gmra.mxu1 %vm331_vm2, %v1508_v60  ;;  %v1098_v61 = vadd.f32 %v3455_v38, %v1029_v37  ;;  %v751_v6 = vld [vmem:[#allocation2 + $0x1a7] sm:$0xff]  ;;  %v752_v31 = vld [vmem:[#allocation2 + $0x1af] sm:$0xff]  ;;  %2247 = vmatmul.msk.f32.gmra.mxu2 %vm412_vm1, %v1763_v11 }
 0x15e   : > { %v961_v55 = vld [vmem:[#allocation2 + $0x1a8] sm:$0xff]  ;;  %3903 = vst [vmem:[#allocation23_spill] sm:$0xff] %v3586_v3  ;;  %v826_v60 = vmul.f32 %v3171_v33, %v751_v6  ;;  %v893_v38 = vmul.f32 %v3197_v58, %v751_v6  ;;  %v3599_v37 = vpop.f32.mrf.mxu2  ;;  %v894_v54 = vmul.f32 %v3197_v58, %v752_v31 }
 0x15f   : > { %v1204_v9 = vld [vmem:[#allocation2 + $0x1a9] sm:$0xff]  ;;  %2020 = vst.msk [vmem:[%s3379_s23 + $0x18] sm:$0xff] %vm2016_vm4, %v1987_v2  ;;  %v1445_v17 = vadd.f32 %v3330_v26, %v1409_v16  ;;  %v1167_v4 = vadd.f32 %v1135_v5, %v1098_v61  ;;  %v1069_v21 = vmul.f32 %v3225_v25, %v961_v55  ;;  %v1136_v46 = vmul.f32 %v3248_v34, %v961_v55 }
 0x160   : > { %v1312_v30 = vmul.f32 %v3255_v24, %v1204_v9  ;;  %3904 = vst [vmem:[#allocation24_spill] sm:$0xff] %v3599_v37  ;;  %v925_v2 = vadd.f32 %v893_v38, %v856_v53  ;;  %v858_v14 = vadd.f32 %v826_v60, %v3501_v1  ;;  %v1379_v49 = vmul.f32 %v3293_v12, %v1204_v9 }
 0x161   : > { %v1477_v16 = vmax.f32 %v1445_v17, 0.0  ;;  %v1653_v3 = vpop.f32.mrf.mxu1  ;;  %v1272_v40 = vadd.f32 %v3360_v59, %v1167_v4  ;;  %v827_v5 = vmul.f32 %v3171_v33, %v752_v31  ;;  %v791_v61 = vmul.f32 %v3178_v7, %v751_v6 }
 0x162   : > { %v1654_v25 = vadd.f32 %v3325_v57, %v1653_v3  ;;  %v1030_v17 = vadd.f32 %v3385_v32, %v925_v2  ;;  %v927_v53 = vadd.f32 %v3467_v0, %v858_v14  ;;  %v926_v60 = vadd.f32 %v894_v54, %v857_v27  ;;  %v3906_v2 = vld [vmem:[#allocation20_spill] sm:$0xff] }
 0x163   : > { %v1509_v11 = vmin.f32 %v1477_v16, 6.0  ;;  %v1341_v1 = vadd.f32 %v3458_v62, %v1272_v40  ;;  %v859_v38 = vadd.f32 %v827_v5, %v790_v13  ;;  %v860_v59 = vadd.f32 %v3426_v19, %v791_v61 }
 0x164   : > { %v1988_v4 = vadd.f32 %v3338_v47, %v1654_v25  ;;  %v1099_v37 = vadd.f32 %v3517_v18, %v1030_v17  ;;  %v1032_v6 = vadd.f32 %v3504_v42, %v927_v53  ;;  %v1002_v3 = vmul.f32 %v3207_v22, %v961_v55 }
 0x165   : > { %2210 = vmatmul.msk.f32.gmra.mxu1 %vm331_vm2, %v1509_v11  ;;  %v1410_v16 = vadd.f32 %v1378_v51, %v1341_v1  ;;  %v1031_v32 = vadd.f32 %v3492_v56, %v926_v60  ;;  %v928_v0 = vadd.f32 %v3521_v45, %v859_v38  ;;  %v929_v62 = vadd.f32 %v3531_v44, %v860_v59  ;;  %v3908_v11 = vld [vmem:[#allocation10_spill] sm:$0xff]  ;;  %v3910_v1 = vld [vmem:[#allocation12_spill] sm:$0xff]  ;;  %v3912_v59 = vld [vmem:[#allocation23_spill] sm:$0xff] }
 0x166   : > { %2021 = vst.msk [vmem:[%s3379_s23 + $0x20] sm:$0xff] %vm2016_vm4, %v1988_v4  ;;  %v1168_v19 = vadd.f32 %v1136_v46, %v1099_v37  ;;  %v1101_v14 = vadd.f32 %v1069_v21, %v1032_v6  ;;  %v1245_v25 = vmul.f32 %v3238_v8, %v1204_v9  ;;  %v792_v47 = vmul.f32 %v3178_v7, %v752_v31  ;;  %v3625_v27 = vpop.f32.mrf.mxu2 }
 0x167   : > { %v1446_v42 = vadd.f32 %v3330_v26, %v1410_v16  ;;  %v1100_v18 = vadd.f32 %v1068_v20, %v1031_v32  ;;  %v1033_v13 = vadd.f32 %v1001_v52, %v928_v0  ;;  %v1034_v51 = vadd.f32 %v1002_v3, %v929_v62  ;;  %v3913_v3 = vld [vmem:[#allocation5_spill] sm:$0xff] }
 0x168   : > { %v1273_v56 = vadd.f32 %v3461_v41, %v1168_v19  ;;  %v1170_v45 = vadd.f32 %v3479_v35, %v1101_v14  ;;  %v861_v44 = vadd.f32 %v3551_v36, %v792_v47  ;;  %v931_v54 = vadd.f32 %v3437_v15, %v862_v39  ;;  %v3905_v15 = vld [vmem:[#allocation17_spill] sm:$0xff]  ;;  %v3915_v19 = vld [vmem:[#allocation11_spill] sm:$0xff] }
 0x169   : > { %v1656_v55 = vpop.f32.mrf.mxu1  ;;  %v1478_v21 = vmax.f32 %v1446_v42, 0.0  ;;  %v1169_v9 = vadd.f32 %v3392_v23, %v1100_v18  ;;  %v1102_v31 = vadd.f32 %v3403_v10, %v1033_v13  ;;  %v1103_v20 = vadd.f32 %v3537_v28, %v1034_v51  ;;  %v3907_v23 = vld [vmem:[#allocation9_spill] sm:$0xff] }
 0x16a   : > { %v1657_v52 = vadd.f32 %v3325_v57, %v1656_v55  ;;  %v1342_v46 = vadd.f32 %v3564_v50, %v1273_v56  ;;  %v1275_v41 = vadd.f32 %v3554_v29, %v1170_v45  ;;  %v930_v37 = vadd.f32 %v898_v63, %v861_v44  ;;  %v3641_v28 = vld [vmem:[#allocation2 + $0x1d1] sm:$0xff]  ;;  %v3662_v62 = vld [vmem:[#allocation2 + $0x1e9] sm:$0xff]  ;;  %v3917_v55 = vld [vmem:[#allocation3_spill] sm:$0xff] }
 0x16b   : > { %v1510_v35 = vmin.f32 %v1478_v21, 6.0  ;;  %v1274_v36 = vadd.f32 %v3495_v43, %v1169_v9  ;;  %v1171_v39 = vadd.f32 %v3905_v15, %v1102_v31  ;;  %v1172_v40 = vadd.f32 %v3906_v2, %v1103_v20  ;;  %v3909_v50 = vld [vmem:[#allocation21_spill] sm:$0xff]  ;;  %v3916_v44 = vld [vmem:[#allocation18_spill] sm:$0xff] }
 0x16c   : > { %v1989_v5 = vadd.f32 %v3907_v23, %v1657_v52  ;;  %v1411_v10 = vadd.f32 %v1379_v49, %v1342_v46  ;;  %v1344_v61 = vadd.f32 %v1312_v30, %v1275_v41  ;;  %v1035_v17 = vadd.f32 %v3908_v11, %v930_v37  ;;  %v3647_v43 = vld [vmem:[#allocation2 + $0x1f0] sm:$0xff]  ;;  %v3911_v49 = vld [vmem:[#allocation14_spill] sm:$0xff]  ;;  %v3674_v46 = vld [vmem:[#allocation2 + $0x208] sm:$0xff] }
 0x16d   : > { %2211 = vmatmul.msk.f32.gmra.mxu1 %vm331_vm2, %v1510_v35  ;;  %v1343_v29 = vadd.f32 %v3909_v50, %v1274_v36  ;;  %v1276_v63 = vadd.f32 %v3580_v48, %v1171_v39  ;;  %v1277_v53 = vadd.f32 %v1245_v25, %v1172_v40  ;;  %v1004_v60 = vmul.f32 %v3207_v22, %v3910_v1  ;;  %v3914_v48 = vld [vmem:[#allocation6_spill] sm:$0xff]  ;;  %v3918_v37 = vld [vmem:[#allocation13_spill] sm:$0xff]  ;;  %v3919_v39 = vld [vmem:[#allocation4_spill] sm:$0xff] }
 0x16e   : > { %2022 = vst.msk [vmem:[%s3379_s23 + $0x28] sm:$0xff] %vm2016_vm4, %v1989_v5  ;;  %v1447_v30 = vadd.f32 %v3330_v26, %v1411_v10  ;;  %v1413_v38 = vadd.f32 %v3911_v49, %v1344_v61  ;;  %v1104_v4 = vadd.f32 %v3912_v59, %v1035_v17  ;;  %v1141_v6 = vmul.f32 %v3248_v34, %v3647_v43  ;;  %v3666_v25 = vpop.f32.mrf.mxu2  ;;  %v758_v23 = vld [vmem:[#allocation2 + $0x20f] sm:$0xff]  ;;  %v3920_v61 = vld [vmem:[#allocation15_spill] sm:$0xff] }
 0x16f   : > { %v1412_v16 = vadd.f32 %v3913_v3, %v1343_v29  ;;  %v1345_v32 = vadd.f32 %v3914_v48, %v1276_v63  ;;  %v1382_v0 = vmul.f32 %v3293_v12, %v3641_v28  ;;  %v1314_v14 = vmul.f32 %v3255_v24, %v3915_v19  ;;  %v3921_v29 = vld [vmem:[#allocation22_spill] sm:$0xff] }
 0x170   : > { %v1479_v47 = vmax.f32 %v1447_v30, 0.0  ;;  %v1449_v42 = vadd.f32 %v3330_v26, %v1413_v38  ;;  %v1383_v18 = vmul.f32 %v3293_v12, %v3662_v62  ;;  %v1036_v45 = vadd.f32 %v1004_v60, %v931_v54  ;;  %v3693_v1 = vld [vmem:[#allocation2 + $0x1f1] sm:$0xff] }
 0x171   : > { %v1659_v13 = vpop.f32.mrf.mxu1  ;;  %v1414_v51 = vadd.f32 %v1382_v0, %v1345_v32  ;;  %v1346_v56 = vadd.f32 %v1314_v14, %v1277_v53  ;;  %v1073_v21 = vmul.f32 %v3917_v55, %v3916_v44  ;;  %v1173_v52 = vadd.f32 %v1141_v6, %v1104_v4  ;;  %v3922_v6 = vld [vmem:[#allocation16_spill] sm:$0xff] }
 0x172   : > { %v1660_v9 = vadd.f32 %v3325_v57, %v1659_v13  ;;  %v1511_v31 = vmin.f32 %v1479_v47, 6.0  ;;  %v1481_v20 = vmax.f32 %v1449_v42, 0.0  ;;  %v1448_v41 = vadd.f32 %v3330_v26, %v1412_v16  ;;  %v759_v16 = vld [vmem:[#allocation2 + $0x227] sm:$0xff] }
 0x173   : > { %v1450_v15 = vadd.f32 %v3330_v26, %v1414_v51  ;;  %v1246_v54 = vmul.f32 %v3238_v8, %v3919_v39  ;;  %v1105_v2 = vadd.f32 %v1073_v21, %v1036_v45  ;;  %v1142_v40 = vmul.f32 %v3248_v34, %v3674_v46  ;;  %v3924_v51 = vld [vmem:[#allocation8_spill] sm:$0xff] }
 0x174   : > { %v1990_v35 = vadd.f32 %v3918_v37, %v1660_v9  ;;  %v1513_v36 = vmin.f32 %v1481_v20, 6.0  ;;  %v1415_v5 = vadd.f32 %v1383_v18, %v1346_v56  ;;  %v794_v11 = vmul.f32 %v3178_v7, %v3920_v61  ;;  %v3923_v18 = vld [vmem:[#allocation7_spill] sm:$0xff]  ;;  %v968_v9 = vld [vmem:[#allocation2 + $0x210] sm:$0xff] }
 0x175   : > { %2212 = vmatmul.msk.f32.gmra.mxu1 %vm331_vm2, %v1511_v31  ;;  %v1278_v10 = vadd.f32 %v1246_v54, %v1173_v52  ;;  %v1480_v17 = vmax.f32 %v1448_v41, 0.0  ;;  %v831_v63 = vmul.f32 %v3171_v33, %v3921_v29  ;;  %v1482_v53 = vmax.f32 %v1450_v15, 0.0  ;;  %v3925_v56 = vld [vmem:[#allocation19_spill] sm:$0xff]  ;;  %v1210_v39 = vld [vmem:[#allocation2 + $0x209] sm:$0xff] }
 0x176   : > { %2023 = vst.msk [vmem:[%s3379_s23 + $0x30] sm:$0xff] %vm2016_vm4, %v1990_v35  ;;  %2214 = vmatmul.msk.f32.vlgmr.msrb.gmra.mxu3 %vm331_vm2, %v1513_v36  ;;  %v3689_v50 = vpop.f32.mrf.mxu2  ;;  %v1315_v60 = vmul.f32 %v3255_v24, %v3641_v28  ;;  %v900_v30 = vmul.f32 %v3197_v58, %v758_v23  ;;  %v1384_v38 = vmul.f32 %v3293_v12, %v3693_v1 }
 0x177   : > { %v1247_v59 = vmul.f32 %v3238_v8, %v3915_v19  ;;  %v863_v4 = vadd.f32 %v831_v63, %v794_v11  ;;  %v1005_v3 = vmul.f32 %v3207_v22, %v3922_v6  ;;  %v1451_v32 = vadd.f32 %v3330_v26, %v1415_v5 }
 0x178   : > { %v1347_v0 = vadd.f32 %v1315_v60, %v1278_v10  ;;  %v1174_v14 = vadd.f32 %v1142_v40, %v1105_v2  ;;  %v1512_v47 = vmin.f32 %v1480_v17, 6.0  ;;  %v795_v13 = vmul.f32 %v3178_v7, %v3923_v18  ;;  %v760_v10 = vld [vmem:[#allocation2 + $0x22f] sm:$0xff] }
 0x179   : > { %v1662_v49 = vpop.f32.mrf.mxu1  ;;  %v932_v42 = vadd.f32 %v900_v30, %v863_v4  ;;  %v832_v19 = vmul.f32 %v3171_v33, %v3924_v51  ;;  %v1514_v21 = vmin.f32 %v1482_v53, 6.0  ;;  %v1074_v31 = vmul.f32 %v3917_v55, %v3647_v43  ;;  %v969_v4 = vld [vmem:[#allocation2 + $0x228] sm:$0xff] }
 0x17a   : > { %v1663_v48 = vadd.f32 %v3325_v57, %v1662_v49  ;;  %v901_v20 = vmul.f32 %v3197_v58, %v759_v16  ;;  %v1483_v37 = vmax.f32 %v1451_v32, 0.0  ;;  %v1279_v35 = vadd.f32 %v1247_v59, %v1174_v14  ;;  %v1211_v32 = vld [vmem:[#allocation2 + $0x211] sm:$0xff] }
 0x17b   : > { %v1037_v52 = vadd.f32 %v1005_v3, %v932_v42  ;;  %v864_v41 = vadd.f32 %v832_v19, %v795_v13  ;;  %v1316_v36 = vmul.f32 %v3255_v24, %v3662_v62  ;;  %v1416_v15 = vadd.f32 %v1384_v38, %v1347_v0 }
 0x17c   : > { %v1991_v45 = vadd.f32 %v3925_v56, %v1663_v48  ;;  %v1143_v54 = vmul.f32 %v3248_v34, %v968_v9  ;;  %v1006_v2 = vmul.f32 %v3207_v22, %v3916_v44  ;;  %v796_v61 = vmul.f32 %v3178_v7, %v3921_v29 }
 0x17d   : > { %2213 = vmatmul.msk.f32.gmra.mxu1 %vm331_vm2, %v1512_v47  ;;  %v1106_v40 = vadd.f32 %v1074_v31, %v1037_v52  ;;  %v933_v5 = vadd.f32 %v901_v20, %v864_v41  ;;  %v833_v11 = vmul.f32 %v3171_v33, %v758_v23  ;;  %v1515_v60 = vmin.f32 %v1483_v37, 6.0  ;;  %v3926_v23 = vld [vmem:[#allocation24_spill] sm:$0xff] }
 0x17e   : > { %2024 = vst.msk [vmem:[%s3379_s23 + $0x38] sm:$0xff] %vm2016_vm4, %v1991_v45  ;;  %2215 = vmatmul.msk.f32.gmra.mxu3 %vm331_vm2, %v1514_v21  ;;  %v3726_v63 = vpop.f32.mrf.mxu2  ;;  %v1348_v30 = vadd.f32 %v1316_v36, %v1279_v35  ;;  %v1385_v49 = vmul.f32 %v3293_v12, %v1210_v39  ;;  %v1452_v44 = vadd.f32 %v3330_v26, %v1416_v15  ;;  %v1212_v36 = vld [vmem:[#allocation2 + $0x229] sm:$0xff] }
 0x17f   : > { %v1248_v38 = vmul.f32 %v3238_v8, %v3641_v28  ;;  %v1075_v7 = vmul.f32 %v3917_v55, %v3674_v46  ;;  %v902_v33 = vmul.f32 %v3197_v58, %v760_v10  ;;  %v1175_v59 = vadd.f32 %v1143_v54, %v1106_v40 }
 0x180   : > { %v1038_v6 = vadd.f32 %v1006_v2, %v933_v5  ;;  %v865_v3 = vadd.f32 %v833_v11, %v796_v61  ;;  %v1484_v16 = vmax.f32 %v1452_v44, 0.0  ;;  %v1417_v48 = vadd.f32 %v1385_v49, %v1348_v30 }
 0x181   : > { %v1665_v17 = vpop.f32.mrf.mxu1  ;;  %v1317_v28 = vmul.f32 %v3255_v24, %v3693_v1  ;;  %v1144_v46 = vmul.f32 %v3248_v34, %v969_v4  ;;  %v1280_v0 = vadd.f32 %v1248_v38, %v1175_v59  ;;  %v1007_v47 = vmul.f32 %v3207_v22, %v3647_v43  ;;  %v970_v22 = vld [vmem:[#allocation2 + $0x230] sm:$0xff] }
 0x182   : > { %v1666_v53 = vadd.f32 %v3325_v57, %v1665_v17  ;;  %v1107_v58 = vadd.f32 %v1075_v7, %v1038_v6  ;;  %v934_v14 = vadd.f32 %v902_v33, %v865_v3  ;;  %v1386_v13 = vmul.f32 %v3293_v12, %v1211_v32 }
 0x183   : > { %v1516_v51 = vmin.f32 %v1484_v16, 6.0  ;;  %v1453_v19 = vadd.f32 %v3330_v26, %v1417_v48  ;;  %v1249_v45 = vmul.f32 %v3238_v8, %v3662_v62  ;;  %v1076_v21 = vmul.f32 %v3917_v55, %v968_v9 }
 0x184   : > { %v1992_v29 = vadd.f32 %v3926_v23, %v1666_v53  ;;  %v1349_v20 = vadd.f32 %v1317_v28, %v1280_v0  ;;  %v1176_v52 = vadd.f32 %v1144_v46, %v1107_v58  ;;  %v1039_v41 = vadd.f32 %v1007_v47, %v934_v14  ;;  %v1213_v53 = vld [vmem:[#allocation2 + $0x231] sm:$0xff]  ;;  %v1764_v46 = vld [vmem:[%s2414_s14 + $0xc8] sm:$0xff] }
 0x185   : > { %v1485_v43 = vmax.f32 %v1453_v19, 0.0  ;;  %v1318_v37 = vmul.f32 %v3255_v24, %v1210_v39  ;;  %v1145_v55 = vmul.f32 %v3248_v34, %v970_v22  ;;  %v1387_v2 = vmul.f32 %v3293_v12, %v1212_v36 }
 0x186   : > { %2025 = vst.msk [vmem:[%s3379_s23 + $0x40] sm:$0xff] %vm2016_vm4, %v1992_v29  ;;  %2216 = vmatmul.msk.f32.gmra.mxu3 %vm331_vm2, %v1515_v60  ;;  %v1927_v56 = vpop.f32.mrf.mxu2  ;;  %v1418_v35 = vadd.f32 %v1386_v13, %v1349_v20  ;;  %v1281_v15 = vadd.f32 %v1249_v45, %v1176_v52  ;;  %v1108_v62 = vadd.f32 %v1076_v21, %v1039_v41  ;;  %v1767_v52 = vld [vmem:[%s2414_s14 + $0xe0] sm:$0xff] }
 0x187   : > { %v1517_v54 = vmin.f32 %v1485_v43, 6.0  ;;  %v1250_v40 = vmul.f32 %v3238_v8, %v3693_v1  ;;  %v1319_v30 = vmul.f32 %v3255_v24, %v1211_v32 }
 0x188   : > { %v1454_v39 = vadd.f32 %v3330_v26, %v1418_v35  ;;  %v1350_v10 = vadd.f32 %v1318_v37, %v1281_v15  ;;  %v1177_v61 = vadd.f32 %v1145_v55, %v1108_v62  ;;  %v1768_v35 = vld [vmem:[%s2414_s14 + $0xe8] sm:$0xff]  ;;  %v1769_v55 = vld [vmem:[%s2414_s14 + $0xf0] sm:$0xff] }
 0x189   : > { %v1668_v42 = vpop.f32.mrf.mxu1 }
 0x18a   : > { %v1669_v18 = vadd.f32 %v3325_v57, %v1668_v42  ;;  %v1486_v34 = vmax.f32 %v1454_v39, 0.0  ;;  %v1419_v17 = vadd.f32 %v1387_v2, %v1350_v10  ;;  %v1282_v60 = vadd.f32 %v1250_v40, %v1177_v61  ;;  %v1765_v42 = vld [vmem:[%s2414_s14 + $0xd0] sm:$0xff]  ;;  %v1770_v40 = vld [vmem:[%s2414_s14 + $0xf8] sm:$0xff] }
 0x18c   : > { %v1993_v31 = vadd.f32 %v3625_v27, %v1669_v18  ;;  %v1518_v44 = vmin.f32 %v1486_v34, 6.0  ;;  %v1455_v38 = vadd.f32 %v3330_v26, %v1419_v17  ;;  %v1351_v7 = vadd.f32 %v1319_v30, %v1282_v60 }
 0x18e   : > { %2026 = vst.msk [vmem:[%s3379_s23 + $0x48] sm:$0xff] %vm2016_vm4, %v1993_v31  ;;  %2217 = vmatmul.msk.f32.gmra.mxu3 %vm331_vm2, %v1516_v51  ;;  %v1930_v11 = vpop.f32.mrf.mxu2  ;;  %v1487_v23 = vmax.f32 %v1455_v38, 0.0 }
 0x190   : > { %v1519_v4 = vmin.f32 %v1487_v23, 6.0 }
 0x191   : > { %v1671_v9 = vpop.f32.mrf.mxu1 }
 0x192   : > { %v1672_v27 = vadd.f32 %v3325_v57, %v1671_v9 }
 0x194   : > { %v1994_v5 = vadd.f32 %v3666_v25, %v1672_v27  ;;  %v1388_v25 = vmul.f32 %v3293_v12, %v1213_v53 }
 0x196   : > { %2027 = vst.msk [vmem:[%s3379_s23 + $0x50] sm:$0xff] %vm2016_vm4, %v1994_v5  ;;  %2218 = vmatmul.msk.f32.gmra.mxu3 %vm331_vm2, %v1517_v54  ;;  %v1933_v33 = vpop.f32.mrf.mxu2  ;;  %v1420_v24 = vadd.f32 %v1388_v25, %v1351_v7 }
 0x199   : > { %v1674_v49 = vpop.f32.mrf.mxu1 }
 0x19a   : > { %v1675_v8 = vadd.f32 %v3325_v57, %v1674_v49 }
 0x19c   : > { %v1995_v1 = vadd.f32 %v3689_v50, %v1675_v8  ;;  %v1456_v50 = vadd.f32 %v3330_v26, %v1420_v24 }
 0x19e   : > { %2028 = vst.msk [vmem:[%s3379_s23 + $0x58] sm:$0xff] %vm2016_vm4, %v1995_v1  ;;  %2219 = vmatmul.msk.f32.gmra.mxu3 %vm331_vm2, %v1518_v44  ;;  %v1488_v6 = vmax.f32 %v1456_v50, 0.0  ;;  %v1936_v16 = vpop.f32.mrf.mxu2 }
 0x1a0   : > { %v1520_v28 = vmin.f32 %v1488_v6, 6.0 }
 0x1a1   : > { %v1677_v29 = vpop.f32.mrf.mxu1 }
 0x1a2   : > { %v1678_v59 = vadd.f32 %v3325_v57, %v1677_v29 }
 0x1a4   : > { %v1996_v12 = vadd.f32 %v3726_v63, %v1678_v59 }
 0x1a6   : > { %2029 = vst.msk [vmem:[%s3379_s23 + $0x60] sm:$0xff] %vm2016_vm4, %v1996_v12  ;;  %2220 = vmatmul.msk.f32.gmra.mxu3 %vm331_vm2, %v1519_v4  ;;  %v1939_v0 = vpop.f32.mrf.mxu2 }
 0x1a9   : > { %v1680_v3 = vpop.f32.mrf.mxu1 }
 0x1aa   : > { %v1681_v48 = vadd.f32 %v3325_v57, %v1680_v3 }
 0x1ac   : > { %v1997_v32 = vadd.f32 %v1927_v56, %v1681_v48  ;;  %v1766_v56 = vld [vmem:[%s2414_s14 + $0xd8] sm:$0xff] }
 0x1ae   : > { %2030 = vst.msk [vmem:[%s3379_s23 + $0x68] sm:$0xff] %vm2016_vm4, %v1997_v32  ;;  %2221 = vmatmul.msk.f32.gmra.mxu3 %vm331_vm2, %v1520_v28  ;;  %v1942_v13 = vpop.f32.mrf.mxu2 }
 0x1b1   : > { %v1683_v63 = vpop.f32.mrf.mxu1 }
 0x1b2   : > { %v1684_v26 = vadd.f32 %v3325_v57, %v1683_v63 }
 0x1b4   : > { %v1998_v58 = vadd.f32 %v1930_v11, %v1684_v26  ;;  %v2312_v26 = vld [vmem:[%s3866_s6] ss:$0 sm:$0xff] }
 0x1b6   : > { %2031 = vst.msk [vmem:[%s3379_s23 + $0x70] sm:$0xff] %vm2016_vm4, %v1998_v58  ;;  %2248 = vmatmul.msk.f32.vlgmr.msra.gmra.mxu3 %vm412_vm1, %v1764_v46  ;;  %v1945_v21 = vpop.f32.mrf.mxu2 }
 0x1b9   : > { %v1686_v14 = vpop.f32.mrf.mxu1 }
 0x1ba   : > { %v1687_v47 = vadd.f32 %v3325_v57, %v1686_v14 }
 0x1bc   : > { %v1999_v18 = vadd.f32 %v1933_v33, %v1687_v47 }
 0x1be   : > { %2032 = vst.msk [vmem:[%s3379_s23 + $0x78] sm:$0xff] %vm2016_vm4, %v1999_v18  ;;  %2249 = vmatmul.msk.f32.gmra.mxu3 %vm412_vm1, %v1765_v42  ;;  %v1948_v22 = vpop.f32.mrf.mxu2 }
 0x1c1   : > { %v1689_v51 = vpop.f32.mrf.mxu1 }
 0x1c2   : > { %v1690_v19 = vadd.f32 %v3325_v57, %v1689_v51 }
 0x1c4   : > { %v2000_v45 = vadd.f32 %v1936_v16, %v1690_v19 }
 0x1c6   : > { %2033 = vst.msk [vmem:[%s3379_s23 + $0x80] sm:$0xff] %vm2016_vm4, %v2000_v45  ;;  %2250 = vmatmul.msk.f32.gmra.mxu3 %vm412_vm1, %v1766_v56  ;;  %v1951_v9 = vpop.f32.mrf.mxu2 }
 0x1c9   : > { %v1692_v31 = vpop.f32.mrf.mxu1 }
 0x1ca   : > { %v1693_v20 = vadd.f32 %v3325_v57, %v1692_v31 }
 0x1cc   : > { %v2001_v41 = vadd.f32 %v1939_v0, %v1693_v20 }
 0x1ce   : > { %2034 = vst.msk [vmem:[%s3379_s23 + $0x88] sm:$0xff] %vm2016_vm4, %v2001_v41  ;;  %2251 = vmatmul.msk.f32.gmra.mxu3 %vm412_vm1, %v1767_v52  ;;  %v1954_v39 = vpop.f32.mrf.mxu2 }
 0x1d2   : > { %v1695_v43 = vpop.f32.mrf.mxu1 }
 0x1d3   : > { %v1696_v37 = vadd.f32 %v3325_v57, %v1695_v43 }
 0x1d5   : > { %v2002_v36 = vadd.f32 %v1942_v13, %v1696_v37 }
 0x1d6   : > { %2252 = vmatmul.msk.f32.gmra.mxu3 %vm412_vm1, %v1768_v35  ;;  %v1957_v34 = vpop.f32.mrf.mxu2 }
 0x1d7   : > { %2035 = vst.msk [vmem:[%s3379_s23 + $0x90] sm:$0xff] %vm2016_vm4, %v2002_v36 }
 0x1da   : > { %v1698_v15 = vpop.f32.mrf.mxu1 }
 0x1db   : > { %v1699_v62 = vadd.f32 %v3325_v57, %v1698_v15 }
 0x1dd   : > { %v2003_v27 = vadd.f32 %v1945_v21, %v1699_v62 }
 0x1de   : > { %2253 = vmatmul.msk.f32.gmra.mxu3 %vm412_vm1, %v1769_v55 }
 0x1df   : > { %2036 = vst.msk [vmem:[%s3379_s23 + $0x98] sm:$0xff] %vm2016_vm4, %v2003_v27 }
 0x1e0   : > { %v1960_v49 = vpop.f32.mrf.mxu2 }
 0x1e2   : > { %v1701_v54 = vpop.f32.mrf.mxu1 }
 0x1e3   : > { %v1702_v2 = vadd.f32 %v3325_v57, %v1701_v54 }
 0x1e5   : > { %v2004_v5 = vadd.f32 %v1948_v22, %v1702_v2 }
 0x1e6   : > { %2254 = vmatmul.msk.f32.gmra.mxu3 %vm412_vm1, %v1770_v40 }
 0x1e7   : > { %2037 = vst.msk [vmem:[%s3379_s23 + $0xa0] sm:$0xff] %vm2016_vm4, %v2004_v5 }
 0x1ea   : > { %v1704_v10 = vpop.f32.mrf.mxu1 }
 0x1eb   : > { %v1705_v61 = vadd.f32 %v3325_v57, %v1704_v10 }
 0x1ed   : > { %v2005_v11 = vadd.f32 %v1951_v9, %v1705_v61 }
 0x1ef   : > { %2038 = vst.msk [vmem:[%s3379_s23 + $0xa8] sm:$0xff] %vm2016_vm4, %v2005_v11 }
 0x1f2   : > { %v1707_v17 = vpop.f32.mrf.mxu1 }
 0x1f3   : > { %v1708_v53 = vadd.f32 %v3325_v57, %v1707_v17 }
 0x1f5   : > { %v2006_v60 = vadd.f32 %v1954_v39, %v1708_v53 }
 0x1f7   : > { %2039 = vst.msk [vmem:[%s3379_s23 + $0xb0] sm:$0xff] %vm2016_vm4, %v2006_v60 }
 0x1f9   : > { %v1713_v30 = vpop.f32.mrf.mxu3 }
 0x1fa   : > { %v1710_v8 = vpop.f32.mrf.mxu1  ;;  %v1714_v25 = vadd.f32 %v3325_v57, %v1713_v30 }
 0x1fb   : > { %v1711_v1 = vadd.f32 %v3325_v57, %v1710_v8 }
 0x1fc   : > { %v2008_v44 = vadd.f32 %v1960_v49, %v1714_v25 }
 0x1fd   : > { %v2007_v38 = vadd.f32 %v1957_v34, %v1711_v1 }
 0x1fe   : > { %2041 = vst.msk [vmem:[%s3379_s23 + $0xc0] sm:$0xff] %vm2016_vm4, %v2008_v44 }
 0x1ff   : > { %2040 = vst.msk [vmem:[%s3379_s23 + $0xb8] sm:$0xff] %vm2016_vm4, %v2007_v38 }
 0x201   : > { %v1716_v7 = vpop.f32.mrf.mxu3 }
 0x202   : > { %v1717_v4 = vadd.f32 %v3325_v57, %v1716_v7 }
 0x209   : > { %v1719_v33 = vpop.f32.mrf.mxu3 }
 0x20a   : > { %v1720_v3 = vadd.f32 %v3325_v57, %v1719_v33 }
 0x211   : > { %v1722_v23 = vpop.f32.mrf.mxu3 }
 0x212   : > { %v1723_v32 = vadd.f32 %v3325_v57, %v1722_v23 }
 0x219   : > { %v1725_v24 = vpop.f32.mrf.mxu3 }
 0x21a   : > { %v1726_v46 = vadd.f32 %v2312_v26, %v1725_v24 }
 0x221   : > { %v1728_v29 = vpop.f32.mrf.mxu3 }
 0x222   : > { %v1729_v14 = vadd.f32 %v2312_v26, %v1728_v29 }
 0x229   : > { %v1731_v59 = vpop.f32.mrf.mxu3 }
 0x22a   : > { %v1732_v57 = vadd.f32 %v2312_v26, %v1731_v59 }
 0x231   : > { %v1734_v12 = vpop.f32.mrf.mxu3 }
 0x232   : > { %v1735_v51 = vadd.f32 %v2312_v26, %v1734_v12 }
 0x239   : > { %v1963_v50 = vpop.f32.mrf.mxu3 }
 0x23a   : > { %v2009_v6 = vadd.f32 %v1963_v50, %v1717_v4 }
 0x23c   : > { %2042 = vst.msk [vmem:[%s3379_s23 + $0xc8] sm:$0xff] %vm2016_vm4, %v2009_v6 }
 0x241   : > { %v1966_v16 = vpop.f32.mrf.mxu3 }
 0x242   : > { %v2010_v48 = vadd.f32 %v1966_v16, %v1720_v3 }
 0x244   : > { %2043 = vst.msk [vmem:[%s3379_s23 + $0xd0] sm:$0xff] %vm2016_vm4, %v2010_v48 }
 0x249   : > { %v1969_v28 = vpop.f32.mrf.mxu3 }
 0x24a   : > { %v2011_v63 = vadd.f32 %v1969_v28, %v1723_v32 }
 0x24c   : > { %2044 = vst.msk [vmem:[%s3379_s23 + $0xd8] sm:$0xff] %vm2016_vm4, %v2011_v63 }
 0x251   : > { %v1972_v0 = vpop.f32.mrf.mxu3 }
 0x252   : > { %v2012_v58 = vadd.f32 %v1972_v0, %v1726_v46 }
 0x254   : > { %2045 = vst.msk [vmem:[%s3379_s23 + $0xe0] sm:$0xff] %vm2016_vm4, %v2012_v58 }
 0x259   : > { %v1975_v47 = vpop.f32.mrf.mxu3 }
 0x25a   : > { %v2013_v42 = vadd.f32 %v1975_v47, %v1729_v14 }
 0x25c   : > { %2046 = vst.msk [vmem:[%s3379_s23 + $0xe8] sm:$0xff] %vm2016_vm4, %v2013_v42 }
 0x261   : > { %v1978_v18 = vpop.f32.mrf.mxu3 }
 0x262   : > { %v2014_v13 = vadd.f32 %v1978_v18, %v1732_v57 }
 0x264   : > { %2047 = vst.msk [vmem:[%s3379_s23 + $0xf0] sm:$0xff] %vm2016_vm4, %v2014_v13 }
 0x269   : > { %v1981_v19 = vpop.f32.mrf.mxu3 }
 0x26a   : > { %v2015_v56 = vadd.f32 %v1981_v19, %v1735_v51 }
 0x26c   : > { %2048 = vst.msk [vmem:[%s3379_s23 + $0xf8] sm:$0xff] %vm2016_vm4, %v2015_v56 }
 0x26d PF: > { %s18_s29 = sadd.s32 1, %s2335_s29   ;;  %s3927_s27 = smov %s2331_s28 }
 0x26e   : > { %p15_p5 = scmp.ge.s32.totalorder %s18_s29, 4   ;;  %s3928_s28 = smov %s3930_s30 }
 0x270   :  { %17 = sbr.rel (!%p15_p5) target bundleno = 2 (0x2), region = 94 }

</bundles_post_ra>
